<compile_context>
chip_gen: v5e
topology: v5e:2x2
jax: 0.10.0
libtpu: 0.0.40
codegen_flags: <defaults>
</compile_context>

<pallas_src>
import jax
import jax.numpy as jnp
import numpy as np
from jax import lax
from jax.experimental import pallas as pl
from jax.experimental.pallas import tpu as pltpu

# contributing ConvTranspose2d(k=4, s=2, p=1) taps per output-pixel parity
_KSET = {0: (1, 3), 1: (0, 2)}


def _make_fused_kernel(Ho, Wo, Cin, Cinner, Cout):
    M = Ho * Wo

    def kernel(x4_ref, wd_ref, wu_ref, y_ref, st_ref, dpad):
        # x4_ref: (4, Ho+1, Wo+1, Cin)  parity-split, zero-padded NHWC input (one image)
        # wd_ref: (16*Cin, Cinner)      im2col down-conv weight matrix
        # wu_ref: (4, 4*Cinner, Cout)   per-phase transposed-conv weight matrices
        # y_ref : (1, M, 4*Cout)        un-normalized up output, phases folded into lanes
        # st_ref: (1, 2, 4*Cout)        per-image per-(phase,channel) [sum ; sum of sq]
        # dpad  : (Ho+2, Wo+2, Cinner)  VMEM scratch: ReLU(d) with spatial zero padding
        xl = x4_ref[...]
        xl = jnp.where(xl > 0, xl, 0.2 * xl)                 # LeakyReLU(0.2), once

        # ---- down conv (4x4, stride 2, pad 1) as one im2col MXU matmul ----
        taps = []
        for kh in range(4):
            for kw in range(4):
                par = (kh % 2) * 2 + (kw % 2)
                dh, dw = kh // 2, kw // 2
                taps.append(xl[par, dh:dh + Ho, dw:dw + Wo, :])
        a = jnp.concatenate(taps, axis=-1).reshape(M, 16 * Cin)
        d = jnp.dot(a, wd_ref[...], preferred_element_type=jnp.float32)
        d = jnp.maximum(d, 0.0)                              # ReLU, applied once

        # ---- keep d resident in VMEM (zero padded) for the up-conv phase matmuls ----
        dpad[...] = jnp.zeros_like(dpad)                     # per-step: megacore-safe
        dpad[1:Ho + 1, 1:Wo + 1, :] = d.reshape(Ho, Wo, Cinner)

        ys = []
        for p in (0, 1):
            for q in (0, 1):
                blocks = []
                for kh in _KSET[p]:
                    r0 = (p + 1 - kh) // 2 + 1
                    for kw in _KSET[q]:
                        c0 = (q + 1 - kw) // 2 + 1
                        blocks.append(dpad[r0:r0 + Ho, c0:c0 + Wo, :])
                pm = jnp.concatenate(blocks, axis=-1).reshape(M, 4 * Cinner)
                ys.append(jnp.dot(pm, wu_ref[2 * p + q],
                                  preferred_element_type=jnp.float32))  # (M, Cout)

        yall = jnp.concatenate(ys, axis=-1)                  # (M, 4*Cout)
        y_ref[0] = yall
        st_ref[0, 0:1, :] = jnp.sum(yall, axis=0, keepdims=True)
        st_ref[0, 1:2, :] = jnp.sum(yall * yall, axis=0, keepdims=True)

    return kernel


@jax.jit
def unet_innermost_forward(x_nchw, w_down, w_up, gamma, beta):
    N, Cin, H, W = x_nchw.shape
    Cinner = w_down.shape[0]            # inner_nc
    Cout = w_up.shape[1]                # outer_nc
    Ho, Wo = H // 2, W // 2
    M = Ho * Wo

    # NHWC + spatial zero-pad, then parity-split so the in-kernel im2col only needs
    # contiguous slices (parity (a,b) holds padded rows a::2 / cols b::2).
    x = jnp.transpose(x_nchw, (0, 2, 3, 1))
    xp = jnp.pad(x, ((0, 0), (1, 1), (1, 1), (0, 0)))
    x4 = jnp.stack([xp[:, a::2, b::2, :] for a in (0, 1) for b in (0, 1)], axis=1)
    x4 = x4.reshape(N * 4, Ho + 1, Wo + 1, Cin)

    # weight matrices (built once, tiny)
    wd_mat = jnp.concatenate(
        [w_down[:, :, kh, kw].T for kh in range(4) for kw in range(4)], axis=0)
    wu_list = []
    for p in (0, 1):
        for q in (0, 1):
            rows = [w_up[:, :, kh, kw] for kh in _KSET[p] for kw in _KSET[q]]
            wu_list.append(jnp.concatenate(rows, axis=0))    # (4*Cinner, Cout)
    wu = jnp.stack(wu_list, axis=0)                          # (4, 4*Cinner, Cout)

    kernel = _make_fused_kernel(Ho, Wo, Cin, Cinner, Cout)
    y, stats = pl.pallas_call(
        kernel,
        out_shape=(jax.ShapeDtypeStruct((N, M, 4 * Cout), jnp.float32),
                   jax.ShapeDtypeStruct((N, 2, 4 * Cout), jnp.float32)),
        grid=(N,),
        in_specs=[
            pl.BlockSpec((4, Ho + 1, Wo + 1, Cin), lambda n: (n, 0, 0, 0)),
            pl.BlockSpec((16 * Cin, Cinner), lambda n: (0, 0)),
            pl.BlockSpec((4, 4 * Cinner, Cout), lambda n: (0, 0, 0)),
        ],
        out_specs=(
            pl.BlockSpec((1, M, 4 * Cout), lambda n: (n, 0, 0)),
            pl.BlockSpec((1, 2, 4 * Cout), lambda n: (n, 0, 0)),
        ),
        scratch_shapes=[pltpu.VMEM((Ho + 2, Wo + 2, Cinner), jnp.float32)],
        # per-image blocks are tiny, so the default scoped-VMEM limit is ample on
        # v5e/v6e/v7x; grid is sharded across v7x's 2 TensorCores via "parallel".
        compiler_params=pltpu.CompilerParams(dimension_semantics=("parallel",)),
    )(x4, wd_mat, wu)

    # BatchNorm2d (training-mode batch stats, biased variance, eps=1e-5): finalize the
    # cross-image / cross-phase reduction on the tiny (N,2,4*Cout) stats, then one
    # fused XLA pass does scale/shift + phase->spatial interleave + NHWC->NCHW + the
    # skip concatenation.
    count = jnp.float32(N * H * W)
    tot = jnp.sum(stats, axis=0).reshape(2, 4, Cout).sum(axis=1)   # (2, Cout)
    mean = tot[0] / count
    var = tot[1] / count - mean * mean
    scale = gamma * lax.rsqrt(var + 1e-5)
    shift = beta - mean * scale
    up = y * jnp.tile(scale, 4)[None, None, :] + jnp.tile(shift, 4)[None, None, :]
    up = up.reshape(N, Ho, Wo, 2, 2, Cout)                         # (n, m, nn, p, q, c)
    up = jnp.transpose(up, (0, 5, 1, 3, 2, 4)).reshape(N, Cout, H, W)
    return jnp.concatenate([x_nchw, up], axis=1)


def _reference(x, w_down, w_up, gamma, beta):
    # pure-JAX reference of the same forward pass
    xl = jnp.where(x > 0, x, 0.2 * x)
    d = lax.conv_general_dilated(xl, w_down, (2, 2), [(1, 1), (1, 1)],
                                 dimension_numbers=('NCHW', 'OIHW', 'NCHW'))
    dr = jnp.maximum(d, 0.0)
    w_eq = jnp.transpose(jnp.flip(w_up, (2, 3)), (1, 0, 2, 3))
    u = lax.conv_general_dilated(dr, w_eq, (1, 1), [(2, 2), (2, 2)],
                                 lhs_dilation=(2, 2),
                                 dimension_numbers=('NCHW', 'OIHW', 'NCHW'))
    mean = u.mean(axis=(0, 2, 3), keepdims=True)
    var = ((u - mean) ** 2).mean(axis=(0, 2, 3), keepdims=True)
    un = (u - mean) * lax.rsqrt(var + 1e-5) * gamma.reshape(1, -1, 1, 1) \
        + beta.reshape(1, -1, 1, 1)
    return jnp.concatenate([x, un], axis=1)


if __name__ == "__main__":
    outer_nc, inner_nc = 4, 8           # innermost: input_nc defaults to outer_nc
    N, H, W = 2, 16, 16
    key = jax.random.PRNGKey(0)
    k1, k2, k3 = jax.random.split(key, 3)
    x = jax.random.normal(k3, (N, outer_nc, H, W), jnp.float32)
    # Conv2d / ConvTranspose2d weights (bias=False since norm_layer is BatchNorm2d)
    w_down = jax.random.normal(k1, (inner_nc, outer_nc, 4, 4), jnp.float32) * 0.1
    w_up = jax.random.normal(k2, (inner_nc, outer_nc, 4, 4), jnp.float32) * 0.1
    gamma = jnp.ones((outer_nc,), jnp.float32)    # BatchNorm2d default init
    beta = jnp.zeros((outer_nc,), jnp.float32)

    out = jax.block_until_ready(unet_innermost_forward(x, w_down, w_up, gamma, beta))
    assert out.shape == (N, 2 * outer_nc, H, W)

    ref = _reference(x, w_down, w_up, gamma, beta)
    # tolerance covers MXU default-precision (bf16-rounded products) on both paths
    np.testing.assert_allclose(np.asarray(out), np.asarray(ref), atol=3e-2, rtol=3e-2)
    print("KERNEL_OK")
</pallas_src>

<mosaic_0001>
module attributes {stable_mosaic.version = 11 : i64} {
  func.func @kernel(%arg0: i32, %arg1: memref<4x9x9x4xf32, #tpu.memory_space<vmem>>, %arg2: memref<64x8xf32, #tpu.memory_space<vmem>>, %arg3: memref<4x32x4xf32, #tpu.memory_space<vmem>>, %arg4: memref<1x64x16xf32, #tpu.memory_space<vmem>>, %arg5: memref<1x2x16xf32, #tpu.memory_space<vmem>>, %arg6: memref<10x10x8xf32, #tpu.memory_space<vmem>>) attributes {dimension_semantics = [#tpu.dimension_semantics<parallel>], iteration_bounds = array<i64: 2>, scalar_prefetch = 0 : i64, scratch_operands = 1 : i64, tpu.core_type = #tpu.core_type<tc>, window_params = [{transform_indices = @transform_0, window_bounds = array<i64: 4, 9, 9, 4>}, {pipeline_mode = #tpu.pipeline_mode<synchronous>, transform_indices = @transform_1, window_bounds = array<i64: 64, 8>}, {pipeline_mode = #tpu.pipeline_mode<synchronous>, transform_indices = @transform_2, window_bounds = array<i64: 4, 32, 4>}, {transform_indices = @transform_3, window_bounds = array<i64: 1, 64, 16>}, {transform_indices = @transform_4, window_bounds = array<i64: 1, 2, 16>}]} {
    %c0 = arith.constant 0 : index
    %c0_0 = arith.constant 0 : index
    %c0_1 = arith.constant 0 : index
    %c0_2 = arith.constant 0 : index
    %0 = vector.load %arg1[%c0, %c0_0, %c0_1, %c0_2] : memref<4x9x9x4xf32, #tpu.memory_space<vmem>>, vector<4x9x9x4xf32>
    %cst = arith.constant 0.000000e+00 : f32
    %1 = vector.broadcast %cst : f32 to vector<4x9x9x4xf32>
    %2 = arith.cmpf ogt, %0, %1 : vector<4x9x9x4xf32>
    %cst_3 = arith.constant 2.000000e-01 : f32
    %3 = vector.broadcast %cst_3 : f32 to vector<4x9x9x4xf32>
    %4 = arith.mulf %3, %0 : vector<4x9x9x4xf32>
    %5 = arith.select %2, %0, %4 : vector<4x9x9x4xi1>, vector<4x9x9x4xf32>
    %6 = vector.extract_strided_slice %5 {offsets = [0, 0, 0, 0], sizes = [1, 8, 8, 4], strides = [1, 1, 1, 1]} : vector<4x9x9x4xf32> to vector<1x8x8x4xf32>
    %7 = vector.shape_cast %6 : vector<1x8x8x4xf32> to vector<8x8x4xf32>
    %8 = vector.extract_strided_slice %5 {offsets = [1, 0, 0, 0], sizes = [1, 8, 8, 4], strides = [1, 1, 1, 1]} : vector<4x9x9x4xf32> to vector<1x8x8x4xf32>
    %9 = vector.shape_cast %8 : vector<1x8x8x4xf32> to vector<8x8x4xf32>
    %10 = vector.extract_strided_slice %5 {offsets = [0, 0, 1, 0], sizes = [1, 8, 8, 4], strides = [1, 1, 1, 1]} : vector<4x9x9x4xf32> to vector<1x8x8x4xf32>
    %11 = vector.shape_cast %10 : vector<1x8x8x4xf32> to vector<8x8x4xf32>
    %12 = vector.extract_strided_slice %5 {offsets = [1, 0, 1, 0], sizes = [1, 8, 8, 4], strides = [1, 1, 1, 1]} : vector<4x9x9x4xf32> to vector<1x8x8x4xf32>
    %13 = vector.shape_cast %12 : vector<1x8x8x4xf32> to vector<8x8x4xf32>
    %14 = vector.extract_strided_slice %5 {offsets = [2, 0, 0, 0], sizes = [1, 8, 8, 4], strides = [1, 1, 1, 1]} : vector<4x9x9x4xf32> to vector<1x8x8x4xf32>
    %15 = vector.shape_cast %14 : vector<1x8x8x4xf32> to vector<8x8x4xf32>
    %16 = vector.extract_strided_slice %5 {offsets = [3, 0, 0, 0], sizes = [1, 8, 8, 4], strides = [1, 1, 1, 1]} : vector<4x9x9x4xf32> to vector<1x8x8x4xf32>
    %17 = vector.shape_cast %16 : vector<1x8x8x4xf32> to vector<8x8x4xf32>
    %18 = vector.extract_strided_slice %5 {offsets = [2, 0, 1, 0], sizes = [1, 8, 8, 4], strides = [1, 1, 1, 1]} : vector<4x9x9x4xf32> to vector<1x8x8x4xf32>
    %19 = vector.shape_cast %18 : vector<1x8x8x4xf32> to vector<8x8x4xf32>
    %20 = vector.extract_strided_slice %5 {offsets = [3, 0, 1, 0], sizes = [1, 8, 8, 4], strides = [1, 1, 1, 1]} : vector<4x9x9x4xf32> to vector<1x8x8x4xf32>
    %21 = vector.shape_cast %20 : vector<1x8x8x4xf32> to vector<8x8x4xf32>
    %22 = vector.extract_strided_slice %5 {offsets = [0, 1, 0, 0], sizes = [1, 8, 8, 4], strides = [1, 1, 1, 1]} : vector<4x9x9x4xf32> to vector<1x8x8x4xf32>
    %23 = vector.shape_cast %22 : vector<1x8x8x4xf32> to vector<8x8x4xf32>
    %24 = vector.extract_strided_slice %5 {offsets = [1, 1, 0, 0], sizes = [1, 8, 8, 4], strides = [1, 1, 1, 1]} : vector<4x9x9x4xf32> to vector<1x8x8x4xf32>
    %25 = vector.shape_cast %24 : vector<1x8x8x4xf32> to vector<8x8x4xf32>
    %26 = vector.extract_strided_slice %5 {offsets = [0, 1, 1, 0], sizes = [1, 8, 8, 4], strides = [1, 1, 1, 1]} : vector<4x9x9x4xf32> to vector<1x8x8x4xf32>
    %27 = vector.shape_cast %26 : vector<1x8x8x4xf32> to vector<8x8x4xf32>
    %28 = vector.extract_strided_slice %5 {offsets = [1, 1, 1, 0], sizes = [1, 8, 8, 4], strides = [1, 1, 1, 1]} : vector<4x9x9x4xf32> to vector<1x8x8x4xf32>
    %29 = vector.shape_cast %28 : vector<1x8x8x4xf32> to vector<8x8x4xf32>
    %30 = vector.extract_strided_slice %5 {offsets = [2, 1, 0, 0], sizes = [1, 8, 8, 4], strides = [1, 1, 1, 1]} : vector<4x9x9x4xf32> to vector<1x8x8x4xf32>
    %31 = vector.shape_cast %30 : vector<1x8x8x4xf32> to vector<8x8x4xf32>
    %32 = vector.extract_strided_slice %5 {offsets = [3, 1, 0, 0], sizes = [1, 8, 8, 4], strides = [1, 1, 1, 1]} : vector<4x9x9x4xf32> to vector<1x8x8x4xf32>
    %33 = vector.shape_cast %32 : vector<1x8x8x4xf32> to vector<8x8x4xf32>
    %34 = vector.extract_strided_slice %5 {offsets = [2, 1, 1, 0], sizes = [1, 8, 8, 4], strides = [1, 1, 1, 1]} : vector<4x9x9x4xf32> to vector<1x8x8x4xf32>
    %35 = vector.shape_cast %34 : vector<1x8x8x4xf32> to vector<8x8x4xf32>
    %36 = vector.extract_strided_slice %5 {offsets = [3, 1, 1, 0], sizes = [1, 8, 8, 4], strides = [1, 1, 1, 1]} : vector<4x9x9x4xf32> to vector<1x8x8x4xf32>
    %37 = vector.shape_cast %36 : vector<1x8x8x4xf32> to vector<8x8x4xf32>
    %38 = tpu.concatenate %7, %9, %11, %13, %15, %17, %19, %21, %23, %25, %27, %29, %31, %33, %35, %37 in 2 : vector<8x8x4xf32>, vector<8x8x4xf32>, vector<8x8x4xf32>, vector<8x8x4xf32>, vector<8x8x4xf32>, vector<8x8x4xf32>, vector<8x8x4xf32>, vector<8x8x4xf32>, vector<8x8x4xf32>, vector<8x8x4xf32>, vector<8x8x4xf32>, vector<8x8x4xf32>, vector<8x8x4xf32>, vector<8x8x4xf32>, vector<8x8x4xf32>, vector<8x8x4xf32> -> vector<8x8x64xf32>
    %39 = vector.shape_cast %38 : vector<8x8x64xf32> to vector<64x64xf32>
    %c0_4 = arith.constant 0 : index
    %c0_5 = arith.constant 0 : index
    %40 = vector.load %arg2[%c0_4, %c0_5] : memref<64x8xf32, #tpu.memory_space<vmem>>, vector<64x8xf32>
    %cst_6 = arith.constant dense<0.000000e+00> : vector<64x8xf32>
    %41 = tpu.matmul %39, %40, %cst_6 {dimension_numbers = #tpu.dot_dimension_numbers<[1], [0], [0], [1], [0, 0, 1, 1], [], []>} : vector<64x64xf32>, vector<64x8xf32>, vector<64x8xf32> -> vector<64x8xf32>
    %cst_7 = arith.constant 0.000000e+00 : f32
    %42 = vector.broadcast %cst_7 : f32 to vector<64x8xf32>
    %43 = arith.maximumf %41, %42 : vector<64x8xf32>
    %cst_8 = arith.constant 0.000000e+00 : f32
    %44 = vector.broadcast %cst_8 : f32 to vector<10x10x8xf32>
    %c0_9 = arith.constant 0 : index
    %c0_10 = arith.constant 0 : index
    %c0_11 = arith.constant 0 : index
    %45 = vector.load %arg6[%c0_9, %c0_10, %c0_11] : memref<10x10x8xf32, #tpu.memory_space<vmem>>, vector<10x10x8xf32>
    tpu.vector_store %arg6[%c0_9, %c0_10, %c0_11], %44 {strides = array<i32>} : memref<10x10x8xf32, #tpu.memory_space<vmem>>, vector<10x10x8xf32>,
    %46 = vector.shape_cast %43 : vector<64x8xf32> to vector<8x8x8xf32>
    %c1 = arith.constant 1 : index
    %c1_12 = arith.constant 1 : index
    %c0_13 = arith.constant 0 : index
    %47 = vector.load %arg6[%c1, %c1_12, %c0_13] : memref<10x10x8xf32, #tpu.memory_space<vmem>>, vector<8x8x8xf32>
    tpu.vector_store %arg6[%c1, %c1_12, %c0_13], %46 {strides = array<i32>} : memref<10x10x8xf32, #tpu.memory_space<vmem>>, vector<8x8x8xf32>,
    %c1_14 = arith.constant 1 : index
    %c1_15 = arith.constant 1 : index
    %c0_16 = arith.constant 0 : index
    %48 = vector.load %arg6[%c1_14, %c1_15, %c0_16] : memref<10x10x8xf32, #tpu.memory_space<vmem>>, vector<8x8x8xf32>
    %c1_17 = arith.constant 1 : index
    %c0_18 = arith.constant 0 : index
    %c0_19 = arith.constant 0 : index
    %49 = vector.load %arg6[%c1_17, %c0_18, %c0_19] : memref<10x10x8xf32, #tpu.memory_space<vmem>>, vector<8x8x8xf32>
    %c0_20 = arith.constant 0 : index
    %c1_21 = arith.constant 1 : index
    %c0_22 = arith.constant 0 : index
    %50 = vector.load %arg6[%c0_20, %c1_21, %c0_22] : memref<10x10x8xf32, #tpu.memory_space<vmem>>, vector<8x8x8xf32>
    %c0_23 = arith.constant 0 : index
    %c0_24 = arith.constant 0 : index
    %c0_25 = arith.constant 0 : index
    %51 = vector.load %arg6[%c0_23, %c0_24, %c0_25] : memref<10x10x8xf32, #tpu.memory_space<vmem>>, vector<8x8x8xf32>
    %52 = tpu.concatenate %48, %49, %50, %51 in 2 : vector<8x8x8xf32>, vector<8x8x8xf32>, vector<8x8x8xf32>, vector<8x8x8xf32> -> vector<8x8x32xf32>
    %53 = vector.shape_cast %52 : vector<8x8x32xf32> to vector<64x32xf32>
    %c0_26 = arith.constant 0 : index
    %c0_27 = arith.constant 0 : index
    %c0_28 = arith.constant 0 : index
    %54 = vector.load %arg3[%c0_26, %c0_27, %c0_28] : memref<4x32x4xf32, #tpu.memory_space<vmem>>, vector<1x32x4xf32>
    %55 = vector.shape_cast %54 : vector<1x32x4xf32> to vector<32x4xf32>
    %cst_29 = arith.constant dense<0.000000e+00> : vector<64x4xf32>
    %56 = tpu.matmul %53, %55, %cst_29 {dimension_numbers = #tpu.dot_dimension_numbers<[1], [0], [0], [1], [0, 0, 1, 1], [], []>} : vector<64x32xf32>, vector<32x4xf32>, vector<64x4xf32> -> vector<64x4xf32>
    %c1_30 = arith.constant 1 : index
    %c2 = arith.constant 2 : index
    %c0_31 = arith.constant 0 : index
    %57 = vector.load %arg6[%c1_30, %c2, %c0_31] : memref<10x10x8xf32, #tpu.memory_space<vmem>>, vector<8x8x8xf32>
    %c1_32 = arith.constant 1 : index
    %c1_33 = arith.constant 1 : index
    %c0_34 = arith.constant 0 : index
    %58 = vector.load %arg6[%c1_32, %c1_33, %c0_34] : memref<10x10x8xf32, #tpu.memory_space<vmem>>, vector<8x8x8xf32>
    %c0_35 = arith.constant 0 : index
    %c2_36 = arith.constant 2 : index
    %c0_37 = arith.constant 0 : index
    %59 = vector.load %arg6[%c0_35, %c2_36, %c0_37] : memref<10x10x8xf32, #tpu.memory_space<vmem>>, vector<8x8x8xf32>
    %c0_38 = arith.constant 0 : index
    %c1_39 = arith.constant 1 : index
    %c0_40 = arith.constant 0 : index
    %60 = vector.load %arg6[%c0_38, %c1_39, %c0_40] : memref<10x10x8xf32, #tpu.memory_space<vmem>>, vector<8x8x8xf32>
    %61 = tpu.concatenate %57, %58, %59, %60 in 2 : vector<8x8x8xf32>, vector<8x8x8xf32>, vector<8x8x8xf32>, vector<8x8x8xf32> -> vector<8x8x32xf32>
    %62 = vector.shape_cast %61 : vector<8x8x32xf32> to vector<64x32xf32>
    %c1_41 = arith.constant 1 : index
    %c0_42 = arith.constant 0 : index
    %c0_43 = arith.constant 0 : index
    %63 = vector.load %arg3[%c1_41, %c0_42, %c0_43] : memref<4x32x4xf32, #tpu.memory_space<vmem>>, vector<1x32x4xf32>
    %64 = vector.shape_cast %63 : vector<1x32x4xf32> to vector<32x4xf32>
    %cst_44 = arith.constant dense<0.000000e+00> : vector<64x4xf32>
    %65 = tpu.matmul %62, %64, %cst_44 {dimension_numbers = #tpu.dot_dimension_numbers<[1], [0], [0], [1], [0, 0, 1, 1], [], []>} : vector<64x32xf32>, vector<32x4xf32>, vector<64x4xf32> -> vector<64x4xf32>
    %c2_45 = arith.constant 2 : index
    %c1_46 = arith.constant 1 : index
    %c0_47 = arith.constant 0 : index
    %66 = vector.load %arg6[%c2_45, %c1_46, %c0_47] : memref<10x10x8xf32, #tpu.memory_space<vmem>>, vector<8x8x8xf32>
    %c2_48 = arith.constant 2 : index
    %c0_49 = arith.constant 0 : index
    %c0_50 = arith.constant 0 : index
    %67 = vector.load %arg6[%c2_48, %c0_49, %c0_50] : memref<10x10x8xf32, #tpu.memory_space<vmem>>, vector<8x8x8xf32>
    %c1_51 = arith.constant 1 : index
    %c1_52 = arith.constant 1 : index
    %c0_53 = arith.constant 0 : index
    %68 = vector.load %arg6[%c1_51, %c1_52, %c0_53] : memref<10x10x8xf32, #tpu.memory_space<vmem>>, vector<8x8x8xf32>
    %c1_54 = arith.constant 1 : index
    %c0_55 = arith.constant 0 : index
    %c0_56 = arith.constant 0 : index
    %69 = vector.load %arg6[%c1_54, %c0_55, %c0_56] : memref<10x10x8xf32, #tpu.memory_space<vmem>>, vector<8x8x8xf32>
    %70 = tpu.concatenate %66, %67, %68, %69 in 2 : vector<8x8x8xf32>, vector<8x8x8xf32>, vector<8x8x8xf32>, vector<8x8x8xf32> -> vector<8x8x32xf32>
    %71 = vector.shape_cast %70 : vector<8x8x32xf32> to vector<64x32xf32>
    %c2_57 = arith.constant 2 : index
    %c0_58 = arith.constant 0 : index
    %c0_59 = arith.constant 0 : index
    %72 = vector.load %arg3[%c2_57, %c0_58, %c0_59] : memref<4x32x4xf32, #tpu.memory_space<vmem>>, vector<1x32x4xf32>
    %73 = vector.shape_cast %72 : vector<1x32x4xf32> to vector<32x4xf32>
    %cst_60 = arith.constant dense<0.000000e+00> : vector<64x4xf32>
    %74 = tpu.matmul %71, %73, %cst_60 {dimension_numbers = #tpu.dot_dimension_numbers<[1], [0], [0], [1], [0, 0, 1, 1], [], []>} : vector<64x32xf32>, vector<32x4xf32>, vector<64x4xf32> -> vector<64x4xf32>
    %c2_61 = arith.constant 2 : index
    %c2_62 = arith.constant 2 : index
    %c0_63 = arith.constant 0 : index
    %75 = vector.load %arg6[%c2_61, %c2_62, %c0_63] : memref<10x10x8xf32, #tpu.memory_space<vmem>>, vector<8x8x8xf32>
    %c2_64 = arith.constant 2 : index
    %c1_65 = arith.constant 1 : index
    %c0_66 = arith.constant 0 : index
    %76 = vector.load %arg6[%c2_64, %c1_65, %c0_66] : memref<10x10x8xf32, #tpu.memory_space<vmem>>, vector<8x8x8xf32>
    %c1_67 = arith.constant 1 : index
    %c2_68 = arith.constant 2 : index
    %c0_69 = arith.constant 0 : index
    %77 = vector.load %arg6[%c1_67, %c2_68, %c0_69] : memref<10x10x8xf32, #tpu.memory_space<vmem>>, vector<8x8x8xf32>
    %c1_70 = arith.constant 1 : index
    %c1_71 = arith.constant 1 : index
    %c0_72 = arith.constant 0 : index
    %78 = vector.load %arg6[%c1_70, %c1_71, %c0_72] : memref<10x10x8xf32, #tpu.memory_space<vmem>>, vector<8x8x8xf32>
    %79 = tpu.concatenate %75, %76, %77, %78 in 2 : vector<8x8x8xf32>, vector<8x8x8xf32>, vector<8x8x8xf32>, vector<8x8x8xf32> -> vector<8x8x32xf32>
    %80 = vector.shape_cast %79 : vector<8x8x32xf32> to vector<64x32xf32>
    %c3 = arith.constant 3 : index
    %c0_73 = arith.constant 0 : index
    %c0_74 = arith.constant 0 : index
    %81 = vector.load %arg3[%c3, %c0_73, %c0_74] : memref<4x32x4xf32, #tpu.memory_space<vmem>>, vector<1x32x4xf32>
    %82 = vector.shape_cast %81 : vector<1x32x4xf32> to vector<32x4xf32>
    %cst_75 = arith.constant dense<0.000000e+00> : vector<64x4xf32>
    %83 = tpu.matmul %80, %82, %cst_75 {dimension_numbers = #tpu.dot_dimension_numbers<[1], [0], [0], [1], [0, 0, 1, 1], [], []>} : vector<64x32xf32>, vector<32x4xf32>, vector<64x4xf32> -> vector<64x4xf32>
    %84 = tpu.concatenate %56, %65, %74, %83 in 1 : vector<64x4xf32>, vector<64x4xf32>, vector<64x4xf32>, vector<64x4xf32> -> vector<64x16xf32>
    %c0_76 = arith.constant 0 : index
    %c0_77 = arith.constant 0 : index
    %c0_78 = arith.constant 0 : index
    %85 = vector.load %arg4[%c0_76, %c0_77, %c0_78] : memref<1x64x16xf32, #tpu.memory_space<vmem>>, vector<1x64x16xf32>
    %86 = vector.shape_cast %85 : vector<1x64x16xf32> to vector<64x16xf32>
    %87 = vector.shape_cast %84 : vector<64x16xf32> to vector<1x64x16xf32>
    tpu.vector_store %arg4[%c0_76, %c0_77, %c0_78], %87 {strides = array<i32>} : memref<1x64x16xf32, #tpu.memory_space<vmem>>, vector<1x64x16xf32>,
    %cst_79 = arith.constant dense<0.000000e+00> : vector<16xf32>
    %88 = vector.multi_reduction <add>, %84, %cst_79 [0] : vector<64x16xf32> to vector<16xf32>
    %89 = vector.shape_cast %88 : vector<16xf32> to vector<1x16xf32>
    %c0_80 = arith.constant 0 : index
    %c0_81 = arith.constant 0 : index
    %c0_82 = arith.constant 0 : index
    %90 = vector.load %arg5[%c0_80, %c0_81, %c0_82] : memref<1x2x16xf32, #tpu.memory_space<vmem>>, vector<1x1x16xf32>
    %91 = vector.shape_cast %90 : vector<1x1x16xf32> to vector<1x16xf32>
    %92 = vector.shape_cast %89 : vector<1x16xf32> to vector<1x1x16xf32>
    tpu.vector_store %arg5[%c0_80, %c0_81, %c0_82], %92 {strides = array<i32>} : memref<1x2x16xf32, #tpu.memory_space<vmem>>, vector<1x1x16xf32>,
    %93 = arith.mulf %84, %84 : vector<64x16xf32>
    %cst_83 = arith.constant dense<0.000000e+00> : vector<16xf32>
    %94 = vector.multi_reduction <add>, %93, %cst_83 [0] : vector<64x16xf32> to vector<16xf32>
    %95 = vector.shape_cast %94 : vector<16xf32> to vector<1x16xf32>
    %c0_84 = arith.constant 0 : index
    %c1_85 = arith.constant 1 : index
    %c0_86 = arith.constant 0 : index
    %96 = vector.load %arg5[%c0_84, %c1_85, %c0_86] : memref<1x2x16xf32, #tpu.memory_space<vmem>>, vector<1x1x16xf32>
    %97 = vector.shape_cast %96 : vector<1x1x16xf32> to vector<1x16xf32>
    %98 = vector.shape_cast %95 : vector<1x16xf32> to vector<1x1x16xf32>
    tpu.vector_store %arg5[%c0_84, %c1_85, %c0_86], %98 {strides = array<i32>} : memref<1x2x16xf32, #tpu.memory_space<vmem>>, vector<1x1x16xf32>,
    return
  }
  func.func @transform_0(%arg0: i32) -> (i32, i32, i32, i32) {
    %c0_i32 = arith.constant 0 : i32
    %c0_i32_0 = arith.constant 0 : i32
    %c0_i32_1 = arith.constant 0 : i32
    %c0_i32_2 = arith.constant 0 : i32
    return %arg0, %c0_i32, %c0_i32_0, %c0_i32_1 : i32, i32, i32, i32
  }
  func.func @transform_1(%arg0: i32) -> (i32, i32) {
    %c0_i32 = arith.constant 0 : i32
    %c0_i32_0 = arith.constant 0 : i32
    %c0_i32_1 = arith.constant 0 : i32
    return %c0_i32, %c0_i32_0 : i32, i32
  }
  func.func @transform_2(%arg0: i32) -> (i32, i32, i32) {
    %c0_i32 = arith.constant 0 : i32
    %c0_i32_0 = arith.constant 0 : i32
    %c0_i32_1 = arith.constant 0 : i32
    %c0_i32_2 = arith.constant 0 : i32
    return %c0_i32, %c0_i32_0, %c0_i32_1 : i32, i32, i32
  }
  func.func @transform_3(%arg0: i32) -> (i32, i32, i32) {
    %c0_i32 = arith.constant 0 : i32
    %c0_i32_0 = arith.constant 0 : i32
    %c0_i32_1 = arith.constant 0 : i32
    return %arg0, %c0_i32, %c0_i32_0 : i32, i32, i32
  }
  func.func @transform_4(%arg0: i32) -> (i32, i32, i32) {
    %c0_i32 = arith.constant 0 : i32
    %c0_i32_0 = arith.constant 0 : i32
    %c0_i32_1 = arith.constant 0 : i32
    return %arg0, %c0_i32, %c0_i32_0 : i32, i32, i32
  }
}

</mosaic_0001>

<bundles_post_ra>
// kernel: tile.18
= control target key start
LH: loop header
LB: loop body
LE: loop exit
PB: predicated region body
PF: predicated region fallthrough
CT: control target
= control target key end

     0   :  { %s22_s0 = inlined_call_operand.vmem [shape: f32[4], index: 0, kind: input, shape index: {}]   ;;  %s23_s1 = inlined_call_operand.vmem [shape: f32[4,4], index: 1, kind: output, shape index: {}]  }
   0x1   :  { %v4_v0 = vld [vmem:[%s22_s0] ss:$0 sm:$0xff] }
   0x2   :  { %5 = vst [vmem:[%s23_s1] sm:$0xf] %v4_v0 }

// kernel: unet_innermost_forward.1
= control target key start
LH: loop header
LB: loop body
LE: loop exit
PB: predicated region body
PF: predicated region fallthrough
CT: control target
= control target key end

     0   :  { %s2504_s15 = smov 0   ;;  %s3973_s0 = inlined_call_operand.vmem [shape: f32[8,9,9,4], index: 0, kind: input, shape index: {}]   ;;  %s3974_s1 = inlined_call_operand.vmem [shape: f32[64,8], index: 1, kind: input, shape index: {}]   ;;  %s3975_s2 = inlined_call_operand.vmem [shape: f32[4,32,4], index: 2, kind: input, shape index: {}]   ;;  %s3976_s3 = inlined_call_operand.vmem [shape: f32[2,64,16], index: 3, kind: output, shape index: {0}]   ;;  %s3977_s4 = inlined_call_operand.vmem [shape: f32[2,2,16], index: 4, kind: output, shape index: {1}]  }
   0x1 LB: > { %s2510_s16 = sadd.s32 4294967295, %s2461_s15   ;;  %p2361_p0 = scmp.ge.s32.totalorder %s2461_s15, 1  ;;  %s2461_s15 = sphi %s2504_s15, %s15_s15  }
   0x2   : > { %p167_p1 = scmp.lt.s32.totalorder %s2461_s15, 3 }
   0x4   : > { %p168_p2 = pnand %p2361_p0, %p167_p1 }
   0x6   : > { %171 = sbr.rel (%p168_p2) target bundleno = 1192 (0x4a8), region = 32 }
   0xb   : > { %s2362_s17 = sshll.u32 %s2510_s16, 2  ;;  %s2463_s22 = smov 4   ;;  %vm550_vm8 = vcmask 1046528  }
   0xc   : > { %p199_p3 = scmp.lt.s32.totalorder %s2362_s17, 7  ;;  %s2464_s23 = smov 8  }
   0xd   : > { %s2465_s24 = smov 12   ;;  %s2466_s25 = smov 16  }
   0xe   : > { %s4160_s17 = smov (!%p199_p3, %s2362_s17), 7  ;;  %s2467_s26 = smov 20  }
   0xf   : > { %s2430_s18 = smul.u32 144, %s4160_s17  ;;  %s2468_s27 = smov 24  }
  0x10   : > { %s2469_s28 = smov 28   ;;  %s2470_s29 = smov 32  }
  0x11   : > { %s2518_s21 = scalar_lea.vmem %s3973_s0, %s2430_s18  ;;  %s2471_s30 = smov 36  }
  0x12   : > { %v240_v0 = vld [vmem:[%s2518_s21 + $0xd0] sm:$0xff]  ;;  %v242_v6 = vld [vmem:[%s2518_s21 + $0xe0] sm:$0xff]  ;;  %v215_v16 = vld [vmem:[%s2518_s21 + $0x8] sm:$0x1]  ;;  %s2472_s5 = smov 44   ;;  %s2473_s6 = smov 48  }
  0x13   : > { %v236_v1 = vld [vmem:[%s2518_s21 + $0xb0] sm:$0xff]  ;;  %vm312_vm0 = vcmp.gt.f32.partialorder %v240_v0, 0.0  ;;  %v384_v3 = vmul.f32 0.2, %v240_v0  ;;  %v238_v7 = vld [vmem:[%s2518_s21 + $0xc0] sm:$0xff]  ;;  %vm314_vm3 = vcmp.gt.f32.partialorder %v242_v6, 0.0 }
  0x14   : > { %v232_v2 = vld [vmem:[%s2518_s21 + $0x90] sm:$0xff]  ;;  %vm308_vm1 = vcmp.gt.f32.partialorder %v236_v1, 0.0  ;;  %v380_v4 = vmul.f32 0.2, %v236_v1  ;;  %v234_v10 = vld [vmem:[%s2518_s21 + $0xa0] sm:$0xff]  ;;  %vm310_vm4 = vcmp.gt.f32.partialorder %v238_v7, 0.0 }
  0x15   : > { %vm304_vm2 = vcmp.gt.f32.partialorder %v232_v2, 0.0  ;;  %v376_v5 = vmul.f32 0.2, %v232_v2  ;;  %v2525_v8 = vsel %vm312_vm0, %v240_v0, %v384_v3  ;;  %v386_v12 = vmul.f32 0.2, %v242_v6  ;;  %v214_v14 = vld [vmem:[%s2518_s21] sm:$0xff] }
  0x16   : > { %v2527_v9 = vsel %vm308_vm1, %v236_v1, %v380_v4  ;;  %518 = vrot.lane.b32.xlu2 %v2525_v8, %s2463_s22  ;;  %v382_v13 = vmul.f32 0.2, %v238_v7  ;;  %v378_v15 = vmul.f32 0.2, %v234_v10  ;;  %vm306_vm5 = vcmp.gt.f32.partialorder %v234_v10, 0.0  ;;  %v246_v17 = vld [vmem:[%s2518_s21 + $0x100] sm:$0xff] }
  0x17   : > { %514 = vrot.lane.b32.xlu1 %v2527_v9, %s2463_s22  ;;  %v2534_v11 = vsel %vm304_vm2, %v232_v2, %v376_v5  ;;  %vm286_vm6 = vcmp.gt.f32.partialorder %v214_v14, 0.0  ;;  %v2541_v18 = vsel %vm314_vm3, %v242_v6, %v386_v12  ;;  %vm287_vm7 = vcmp.gt.f32.partialorder %v215_v16, 0.0  ;;  %v218_v21 = vld [vmem:[%s2518_s21 + $0x20] sm:$0xff]  ;;  %v219_v22 = vld [vmem:[%s2518_s21 + $0x28] sm:$0x1]  ;;  %v216_v25 = vld [vmem:[%s2518_s21 + $0x10] sm:$0xff] }
  0x18   : > { %510 = vrot.lane.b32.xlu0 %v2534_v11, %s2463_s22  ;;  %v2543_v19 = vsel %vm310_vm4, %v238_v7, %v382_v13  ;;  %v358_v20 = vmul.f32 0.2, %v214_v14  ;;  %v2547_v23 = vsel %vm306_vm5, %v234_v10, %v378_v15  ;;  %v359_v24 = vmul.f32 0.2, %v215_v16  ;;  %v217_v26 = vld [vmem:[%s2518_s21 + $0x18] sm:$0x1] }
  0x19   : > { %vm318_vm9 = vcmp.gt.f32.partialorder %v246_v17, 0.0  ;;  %v390_v27 = vmul.f32 0.2, %v246_v17  ;;  %v244_v28 = vld [vmem:[%s2518_s21 + $0xf0] sm:$0xff]  ;;  %v221_v30 = vld [vmem:[%s2518_s21 + $0x38] sm:$0x1] }
  0x1a   : > { %v2552_v29 = vsel %vm286_vm6, %v214_v14, %v358_v20  ;;  %v431_v31 = vsel %vm287_vm7, %v215_v16, %v359_v24  ;;  %vm290_vm10 = vcmp.gt.f32.partialorder %v218_v21, 0.0  ;;  %v362_v32 = vmul.f32 0.2, %v218_v21  ;;  %v220_v34 = vld [vmem:[%s2518_s21 + $0x30] sm:$0xff]  ;;  %v225_v52 = vld [vmem:[%s2518_s21 + $0x58] sm:$0x1] }
  0x1b   : > { %3996 = vst [vmem:[#allocation3_spill] sm:$0xff] %v2552_v29  ;;  %v363_v33 = vmul.f32 0.2, %v219_v22  ;;  %v551_v35 = vrot.slane %v2552_v29, 1  ;;  %v552_v36 = vrot.slane %v431_v31, 1  ;;  %vm291_vm11 = vcmp.gt.f32.partialorder %v219_v22, 0.0 }
  0x1c   : > { %v360_v37 = vmul.f32 0.2, %v216_v25  ;;  %v361_v38 = vmul.f32 0.2, %v217_v26  ;;  %v388_v39 = vmul.f32 0.2, %v244_v28  ;;  %v2565_v40 = vsel %vm318_vm9, %v246_v17, %v390_v27 }
  0x1d   : > { %vm288_vm12 = vcmp.gt.f32.partialorder %v216_v25, 0.0  ;;  %vm289_vm13 = vcmp.gt.f32.partialorder %v217_v26, 0.0  ;;  %vm316_vm14 = vcmp.gt.f32.partialorder %v244_v28, 0.0  ;;  %vm292_vm15 = vcmp.gt.f32.partialorder %v220_v34, 0.0  ;;  %3997 = vst [vmem:[#allocation4_spill] sm:$0xff] %v2565_v40  ;;  %v224_v48 = vld [vmem:[%s2518_s21 + $0x50] sm:$0xff] }
  0x1e   : > { %520 = vrot.lane.b32.xlu2 %v2541_v18, %s2463_s22  ;;  %vm293_vm0 = vcmp.gt.f32.partialorder %v221_v30, 0.0  ;;  %v2568_v41 = vsel %vm290_vm10, %v218_v21, %v362_v32  ;;  %v364_v42 = vmul.f32 0.2, %v220_v34  ;;  %v365_v43 = vmul.f32 0.2, %v221_v30  ;;  %v222_v54 = vld [vmem:[%s2518_s21 + $0x40] sm:$0xff] }
  0x1f   : > { %516 = vrot.lane.b32.xlu1 %v2543_v19, %s2463_s22  ;;  %v553_v44 = vsel %vm550_vm8, %v551_v35, %v552_v36  ;;  %v435_v45 = vsel %vm291_vm11, %v219_v22, %v363_v33  ;;  %v2571_v46 = vsel %vm288_vm12, %v216_v25, %v360_v37  ;;  %v433_v47 = vsel %vm289_vm13, %v217_v26, %v361_v38  ;;  %v226_v55 = vld [vmem:[%s2518_s21 + $0x60] sm:$0xff]  ;;  %v227_v56 = vld [vmem:[%s2518_s21 + $0x68] sm:$0x1]  ;;  %v233_v17 = vld [vmem:[%s2518_s21 + $0x98] sm:$0x1]  ;;  %s2474_s7 = smov 40  }
  0x20   : > { %512 = vrot.lane.b32.xlu0 %v2547_v23, %s2463_s22  ;;  %v2574_v49 = vsel %vm316_vm14, %v244_v28, %v388_v39  ;;  %v2576_v50 = vsel %vm292_vm15, %v220_v34, %v364_v42  ;;  %v437_v51 = vsel %vm293_vm0, %v221_v30, %v365_v43  ;;  %v557_v53 = vrot.slane %v2568_v41, 1  ;;  %v223_v60 = vld [vmem:[%s2518_s21 + $0x48] sm:$0x1]  ;;  %v228_v21 = vld [vmem:[%s2518_s21 + $0x70] sm:$0xff]  ;;  %v229_v22 = vld [vmem:[%s2518_s21 + $0x78] sm:$0x1] }
  0x21   : > { %3998 = vst [vmem:[#allocation5_spill] sm:$0xff] %v2576_v50  ;;  %v558_v57 = vrot.slane %v435_v45, 1  ;;  %v554_v58 = vrot.slane %v2571_v46, 1  ;;  %v555_v59 = vrot.slane %v433_v47, 1  ;;  %vm296_vm1 = vcmp.gt.f32.partialorder %v224_v48, 0.0  ;;  %s2475_s8 = smov 56  }
  0x22   : > { %v560_v61 = vrot.slane %v2576_v50, 1  ;;  %v561_v62 = vrot.slane %v437_v51, 1  ;;  %vm297_vm2 = vcmp.gt.f32.partialorder %v225_v52, 0.0  ;;  %v368_v63 = vmul.f32 0.2, %v224_v48  ;;  %s2476_s9 = smov 60  }
  0x23   : > { %v369_v0 = vmul.f32 0.2, %v225_v52  ;;  %v370_v1 = vmul.f32 0.2, %v226_v55  ;;  %v371_v2 = vmul.f32 0.2, %v227_v56  ;;  %v2592_v5 = vsel %vm550_vm8, %v557_v53, %v558_v57 }
  0x24   : > { %v366_v3 = vmul.f32 0.2, %v222_v54  ;;  %v367_v4 = vmul.f32 0.2, %v223_v60  ;;  %vm298_vm3 = vcmp.gt.f32.partialorder %v226_v55, 0.0  ;;  %vm299_vm4 = vcmp.gt.f32.partialorder %v227_v56, 0.0 }
  0x25   : > { %vm294_vm5 = vcmp.gt.f32.partialorder %v222_v54, 0.0  ;;  %vm295_vm6 = vcmp.gt.f32.partialorder %v223_v60, 0.0  ;;  %v2595_v6 = vsel %vm550_vm8, %v554_v58, %v555_v59  ;;  %v2598_v7 = vsel %vm550_vm8, %v560_v61, %v561_v62  ;;  %v235_v20 = vld [vmem:[%s2518_s21 + $0xa8] sm:$0x1]  ;;  %v241_v45 = vld [vmem:[%s2518_s21 + $0xd8] sm:$0x1] }
  0x26   : > { %575 = vrot.lane.b32.xlu2 %v553_v44, %s2464_s23  ;;  %v2601_v10 = vsel %vm296_vm1, %v224_v48, %v368_v63  ;;  %v441_v12 = vsel %vm297_vm2, %v225_v52, %v369_v0  ;;  %v2603_v13 = vsel %vm298_vm3, %v226_v55, %v370_v1  ;;  %v443_v14 = vsel %vm299_vm4, %v227_v56, %v371_v2  ;;  %v239_v44 = vld [vmem:[%s2518_s21 + $0xc8] sm:$0x1]  ;;  %v237_v47 = vld [vmem:[%s2518_s21 + $0xb8] sm:$0x1]  ;;  %s2477_s10 = smov 52   ;;  %p205_p4 = scmp.lt.s32.totalorder %s2510_s16, 1 }
  0x27   : > { %524 = vrot.lane.b32.xlu1 %v2565_v40, %s2463_s22  ;;  %v2605_v15 = vsel %vm294_vm5, %v222_v54, %v366_v3  ;;  %v439_v16 = vsel %vm295_vm6, %v223_v60, %v367_v4  ;;  %v566_v24 = vrot.slane %v2601_v10, 1  ;;  %v567_v25 = vrot.slane %v441_v12, 1  ;;  %v245_v0 = vld [vmem:[%s2518_s21 + $0xf8] sm:$0x1]  ;;  %v247_v1 = vld [vmem:[%s2518_s21 + $0x108] sm:$0x1] }
  0x28   : > { %522 = vrot.lane.b32.xlu0 %v2574_v49, %s2463_s22  ;;  %v569_v26 = vrot.slane %v2603_v13, 1  ;;  %v570_v27 = vrot.slane %v443_v14, 1  ;;  %v563_v28 = vrot.slane %v2605_v15, 1  ;;  %v564_v30 = vrot.slane %v439_v16, 1  ;;  %v243_v2 = vld [vmem:[%s2518_s21 + $0xe8] sm:$0x1] }
  0x29   : > { %v377_v31 = vmul.f32 0.2, %v233_v17  ;;  %v379_v32 = vmul.f32 0.2, %v235_v20  ;;  %vm305_vm7 = vcmp.gt.f32.partialorder %v233_v17, 0.0  ;;  %vm307_vm9 = vcmp.gt.f32.partialorder %v235_v20, 0.0 }
  0x2a   : > { %v372_v33 = vmul.f32 0.2, %v228_v21  ;;  %v373_v34 = vmul.f32 0.2, %v229_v22  ;;  %vm300_vm10 = vcmp.gt.f32.partialorder %v228_v21, 0.0  ;;  %vm301_vm11 = vcmp.gt.f32.partialorder %v229_v22, 0.0 }
  0x2b   : > { %v2621_v35 = vsel %vm550_vm8, %v566_v24, %v567_v25  ;;  %v2624_v36 = vsel %vm550_vm8, %v569_v26, %v570_v27  ;;  %v2627_v37 = vsel %vm550_vm8, %v563_v28, %v564_v30  ;;  %v449_v38 = vsel %vm305_vm7, %v233_v17, %v377_v31  ;;  %v269_v29 = vld [vmem:[%s2518_s21 + $0x1b8] sm:$0x1]  ;;  %s4162_s16 = smov (!%p205_p4, %s2510_s16), 1 }
  0x2c   : > { %3999 = vst [vmem:[#allocation6_spill] sm:$0xff] %v2624_v36  ;;  %v451_v39 = vsel %vm307_vm9, %v235_v20, %v379_v32  ;;  %v2629_v42 = vsel %vm300_vm10, %v228_v21, %v372_v33  ;;  %v445_v43 = vsel %vm301_vm11, %v229_v22, %v373_v34  ;;  %v607_v48 = vrot.slane %v2534_v11, 1 }
  0x2d   : > { %v610_v51 = vrot.slane %v2547_v23, 1  ;;  %v608_v52 = vrot.slane %v449_v38, 1  ;;  %v611_v53 = vrot.slane %v451_v39, 1  ;;  %v572_v54 = vrot.slane %v2629_v42, 1 }
  0x2e   : > { %581 = vrot.lane.b32.xlu2 %v2598_v7, %s2464_s23  ;;  %v573_v55 = vrot.slane %v445_v43, 1  ;;  %v383_v56 = vmul.f32 0.2, %v239_v44  ;;  %v385_v57 = vmul.f32 0.2, %v241_v45  ;;  %vm311_vm12 = vcmp.gt.f32.partialorder %v239_v44, 0.0 }
  0x2f   : > { %579 = vrot.lane.b32.xlu1 %v2592_v5, %s2464_s23  ;;  %v381_v58 = vmul.f32 0.2, %v237_v47  ;;  %vm313_vm13 = vcmp.gt.f32.partialorder %v241_v45, 0.0  ;;  %vm309_vm14 = vcmp.gt.f32.partialorder %v237_v47, 0.0  ;;  %v609_v11 = vsel %vm550_vm8, %v607_v48, %v608_v52  ;;  %v254_v48 = vld [vmem:[%s2518_s21 + $0x140] sm:$0xff] }
  0x30   : > { %577 = vrot.lane.b32.xlu0 %v2595_v6, %s2464_s23  ;;  %v2645_v59 = vsel %vm550_vm8, %v610_v51, %v611_v53  ;;  %v2648_v60 = vsel %vm550_vm8, %v572_v54, %v573_v55  ;;  %v455_v61 = vsel %vm311_vm12, %v239_v44, %v383_v56  ;;  %v457_v62 = vsel %vm313_vm13, %v241_v45, %v385_v57  ;;  %v250_v51 = vld [vmem:[%s2518_s21 + $0x120] sm:$0xff] }
  0x31   : > { %4000 = vst [vmem:[#allocation7_spill] sm:$0xff] %v2648_v60  ;;  %v453_v63 = vsel %vm309_vm14, %v237_v47, %v381_v58  ;;  %v619_v3 = vrot.slane %v2525_v8, 1  ;;  %v616_v4 = vrot.slane %v2543_v19, 1  ;;  %v617_v12 = vrot.slane %v455_v61, 1  ;;  %v252_v47 = vld [vmem:[%s2518_s21 + $0x130] sm:$0xff]  ;;  %v258_v58 = vld [vmem:[%s2518_s21 + $0x160] sm:$0xff] }
  0x32   : > { %v620_v14 = vrot.slane %v457_v62, 1  ;;  %v613_v16 = vrot.slane %v2527_v9, 1  ;;  %v614_v17 = vrot.slane %v453_v63, 1  ;;  %v389_v20 = vmul.f32 0.2, %v245_v0  ;;  %v256_v61 = vld [vmem:[%s2518_s21 + $0x150] sm:$0xff] }
  0x33   : > { %v391_v21 = vmul.f32 0.2, %v247_v1  ;;  %vm317_vm15 = vcmp.gt.f32.partialorder %v245_v0, 0.0  ;;  %v387_v22 = vmul.f32 0.2, %v243_v2  ;;  %vm319_vm0 = vcmp.gt.f32.partialorder %v247_v1, 0.0 }
  0x34   : > { %vm315_vm1 = vcmp.gt.f32.partialorder %v243_v2, 0.0  ;;  %v2662_v24 = vsel %vm550_vm8, %v616_v4, %v617_v12  ;;  %v2665_v25 = vsel %vm550_vm8, %v619_v3, %v620_v14  ;;  %v2668_v26 = vsel %vm550_vm8, %v613_v16, %v614_v17  ;;  %v264_v4 = vld [vmem:[%s2518_s21 + $0x190] sm:$0xff]  ;;  %v262_v14 = vld [vmem:[%s2518_s21 + $0x180] sm:$0xff] }
  0x35   : > { %v461_v27 = vsel %vm317_vm15, %v245_v0, %v389_v20  ;;  %v463_v28 = vsel %vm319_vm0, %v247_v1, %v391_v21  ;;  %v459_v30 = vsel %vm315_vm1, %v243_v2, %v387_v22  ;;  %v628_v31 = vrot.slane %v2565_v40, 1  ;;  %v268_v12 = vld [vmem:[%s2518_s21 + $0x1b0] sm:$0xff]  ;;  %v265_v40 = vld [vmem:[%s2518_s21 + $0x198] sm:$0x1] }
  0x36   : > { %587 = vrot.lane.b32.xlu2 %v2624_v36, %s2464_s23  ;;  %v625_v32 = vrot.slane %v2574_v49, 1  ;;  %v626_v33 = vrot.slane %v461_v27, 1  ;;  %v629_v34 = vrot.slane %v463_v28, 1  ;;  %v622_v38 = vrot.slane %v2541_v18, 1  ;;  %v272_v28 = vld [vmem:[%s2518_s21 + $0x1d0] sm:$0xff] }
  0x37   : > { %585 = vrot.lane.b32.xlu1 %v2621_v35, %s2464_s23  ;;  %v623_v39 = vrot.slane %v459_v30, 1  ;;  %v396_v52 = vmul.f32 0.2, %v252_v47  ;;  %v398_v53 = vmul.f32 0.2, %v254_v48  ;;  %vm324_vm2 = vcmp.gt.f32.partialorder %v252_v47, 0.0 }
  0x38   : > { %583 = vrot.lane.b32.xlu0 %v2627_v37, %s2464_s23  ;;  %v2680_v43 = vsel %vm550_vm8, %v625_v32, %v626_v33  ;;  %v2683_v44 = vsel %vm550_vm8, %v628_v31, %v629_v34  ;;  %v394_v54 = vmul.f32 0.2, %v250_v51  ;;  %vm326_vm3 = vcmp.gt.f32.partialorder %v254_v48, 0.0  ;;  %v274_v30 = vld [vmem:[%s2518_s21 + $0x1e0] sm:$0xff] }
  0x39   : > { %4001 = vst [vmem:[#allocation8_spill] sm:$0xff] %v2680_v43  ;;  %v2686_v45 = vsel %vm550_vm8, %v622_v38, %v623_v39  ;;  %vm322_vm4 = vcmp.gt.f32.partialorder %v250_v51, 0.0  ;;  %v2697_v55 = vsel %vm324_vm2, %v252_v47, %v396_v52  ;;  %v2699_v56 = vsel %vm326_vm3, %v254_v48, %v398_v53  ;;  %v270_v31 = vld [vmem:[%s2518_s21 + $0x1c0] sm:$0xff]  ;;  %v280_v52 = vld [vmem:[%s2518_s21 + $0x210] sm:$0xff]  ;;  %v251_v53 = vld [vmem:[%s2518_s21 + $0x128] sm:$0x1] }
  0x3a   : > { %4002 = vst [vmem:[#allocation9_spill] sm:$0xff] %v2683_v44  ;;  %v2701_v57 = vsel %vm322_vm4, %v250_v51, %v394_v54  ;;  %v402_v62 = vmul.f32 0.2, %v258_v58  ;;  %vm330_vm5 = vcmp.gt.f32.partialorder %v258_v58, 0.0  ;;  %v400_v0 = vmul.f32 0.2, %v256_v61 }
  0x3b   : > { %vm328_vm7 = vcmp.gt.f32.partialorder %v256_v61, 0.0  ;;  %v408_v16 = vmul.f32 0.2, %v264_v4  ;;  %v412_v17 = vmul.f32 0.2, %v268_v12  ;;  %vm336_vm9 = vcmp.gt.f32.partialorder %v264_v4, 0.0 }
  0x3c   : > { %v2712_v1 = vsel %vm330_vm5, %v258_v58, %v402_v62  ;;  %v2716_v3 = vsel %vm328_vm7, %v256_v61, %v400_v0  ;;  %v406_v20 = vmul.f32 0.2, %v262_v14  ;;  %vm340_vm10 = vcmp.gt.f32.partialorder %v268_v12, 0.0  ;;  %v278_v48 = vld [vmem:[%s2518_s21 + $0x200] sm:$0xff]  ;;  %v276_v51 = vld [vmem:[%s2518_s21 + $0x1f0] sm:$0xff] }
  0x3d   : > { %vm334_vm11 = vcmp.gt.f32.partialorder %v262_v14, 0.0  ;;  %v2727_v21 = vsel %vm336_vm9, %v264_v4, %v408_v16  ;;  %v2729_v22 = vsel %vm340_vm10, %v268_v12, %v412_v17  ;;  %v416_v32 = vmul.f32 0.2, %v272_v28  ;;  %v253_v54 = vld [vmem:[%s2518_s21 + $0x138] sm:$0x1] }
  0x3e   : > { %633 = vrot.lane.b32.xlu2 %v2645_v59, %s2465_s24  ;;  %4003 = vst [vmem:[#allocation10_spill] sm:$0xff] %v2727_v21  ;;  %v2731_v27 = vsel %vm334_vm11, %v262_v14, %v406_v20  ;;  %v418_v33 = vmul.f32 0.2, %v274_v30  ;;  %vm344_vm12 = vcmp.gt.f32.partialorder %v272_v28, 0.0  ;;  %v414_v34 = vmul.f32 0.2, %v270_v31 }
  0x3f   : > { %631 = vrot.lane.b32.xlu1 %v609_v11, %s2465_s24  ;;  %v260_v11 = vld [vmem:[%s2518_s21 + $0x170] sm:$0xff]  ;;  %4004 = vst [vmem:[#allocation11_spill] sm:$0xff] %v2731_v27  ;;  %vm346_vm13 = vcmp.gt.f32.partialorder %v274_v30, 0.0  ;;  %vm342_vm14 = vcmp.gt.f32.partialorder %v270_v31, 0.0  ;;  %v2742_v38 = vsel %vm344_vm12, %v272_v28, %v416_v32  ;;  %v422_v58 = vmul.f32 0.2, %v278_v48 }
  0x40   : > { %589 = vrot.lane.b32.xlu0 %v2648_v60, %s2464_s23  ;;  %v404_v63 = vmul.f32 0.2, %v260_v11  ;;  %vm332_vm6 = vcmp.gt.f32.partialorder %v260_v11, 0.0  ;;  %v2744_v39 = vsel %vm346_vm13, %v274_v30, %v418_v33  ;;  %v2746_v47 = vsel %vm342_vm14, %v270_v31, %v414_v34  ;;  %v282_v20 = vld [vmem:[%s2518_s21 + $0x220] sm:$0xff]  ;;  %v257_v28 = vld [vmem:[%s2518_s21 + $0x158] sm:$0x1] }
  0x41   : > { %v424_v61 = vmul.f32 0.2, %v280_v52  ;;  %vm350_vm15 = vcmp.gt.f32.partialorder %v278_v48, 0.0  ;;  %vm352_vm0 = vcmp.gt.f32.partialorder %v280_v52, 0.0  ;;  %v397_v0 = vmul.f32 0.2, %v253_v54 }
  0x42   : > { %v2714_v2 = vsel %vm332_vm6, %v260_v11, %v404_v63  ;;  %v420_v11 = vmul.f32 0.2, %v276_v51  ;;  %v395_v63 = vmul.f32 0.2, %v251_v53  ;;  %vm348_vm1 = vcmp.gt.f32.partialorder %v276_v51, 0.0 }
  0x43   : > { %vm323_vm2 = vcmp.gt.f32.partialorder %v251_v53, 0.0  ;;  %vm325_vm3 = vcmp.gt.f32.partialorder %v253_v54, 0.0  ;;  %v2761_v4 = vsel %vm350_vm15, %v278_v48, %v422_v58  ;;  %v2763_v12 = vsel %vm352_vm0, %v280_v52, %v424_v61  ;;  %v259_v30 = vld [vmem:[%s2518_s21 + $0x168] sm:$0x1] }
  0x44   : > { %v2765_v14 = vsel %vm348_vm1, %v276_v51, %v420_v11  ;;  %v467_v16 = vsel %vm323_vm2, %v251_v53, %v395_v63  ;;  %v469_v17 = vsel %vm325_vm3, %v253_v54, %v397_v0  ;;  %v255_v31 = vld [vmem:[%s2518_s21 + $0x148] sm:$0x1]  ;;  %v730_v32 = vrot.slane %v2697_v55, 1 }
  0x45   : > { %v727_v33 = vrot.slane %v2701_v57, 1  ;;  %v728_v34 = vrot.slane %v467_v16, 1  ;;  %v731_v48 = vrot.slane %v469_v17, 1  ;;  %v426_v52 = vmul.f32 0.2, %v282_v20 }
  0x46   : > { %639 = vrot.lane.b32.xlu2 %v2665_v25, %s2465_s24  ;;  %v401_v53 = vmul.f32 0.2, %v257_v28  ;;  %v403_v54 = vmul.f32 0.2, %v259_v30  ;;  %vm354_vm4 = vcmp.gt.f32.partialorder %v282_v20, 0.0  ;;  %vm329_vm5 = vcmp.gt.f32.partialorder %v257_v28, 0.0 }
  0x47   : > { %637 = vrot.lane.b32.xlu1 %v2662_v24, %s2465_s24  ;;  %v399_v58 = vmul.f32 0.2, %v255_v31  ;;  %vm331_vm6 = vcmp.gt.f32.partialorder %v259_v30, 0.0  ;;  %vm327_vm7 = vcmp.gt.f32.partialorder %v255_v31, 0.0  ;;  %v2783_v11 = vsel %vm550_vm8, %v730_v32, %v731_v48  ;;  %v263_v17 = vld [vmem:[%s2518_s21 + $0x188] sm:$0x1] }
  0x48   : > { %635 = vrot.lane.b32.xlu0 %v2668_v26, %s2465_s24  ;;  %v2785_v61 = vsel %vm354_vm4, %v282_v20, %v426_v52  ;;  %v473_v63 = vsel %vm329_vm5, %v257_v28, %v401_v53  ;;  %v475_v0 = vsel %vm331_vm6, %v259_v30, %v403_v54  ;;  %v739_v60 = vrot.slane %v2712_v1, 1 }
  0x49   : > { %v471_v16 = vsel %vm327_vm7, %v255_v31, %v399_v58  ;;  %v737_v20 = vrot.slane %v473_v63, 1  ;;  %v740_v28 = vrot.slane %v475_v0, 1  ;;  %v733_v30 = vrot.slane %v2699_v56, 1 }
  0x4a   : > { %v734_v32 = vrot.slane %v471_v16, 1  ;;  %v409_v48 = vmul.f32 0.2, %v265_v40  ;;  %vm335_vm9 = vcmp.gt.f32.partialorder %v263_v17, 0.0  ;;  %vm337_vm10 = vcmp.gt.f32.partialorder %v265_v40, 0.0 }
  0x4b   : > { %v2804_v54 = vsel %vm550_vm8, %v739_v60, %v740_v28  ;;  %v271_v16 = vld [vmem:[%s2518_s21 + $0x1c8] sm:$0x1]  ;;  %v745_v60 = vrot.slane %v2731_v27, 1  ;;  %vm341_vm14 = vcmp.gt.f32.partialorder %v269_v29, 0.0  ;;  %vm3989_vm4 = vcmask 31744  }
  0x4c   : > { %v2807_v58 = vsel %vm550_vm8, %v733_v30, %v734_v32  ;;  %v481_v63 = vsel %vm337_vm10, %v265_v40, %v409_v48  ;;  %v742_v40 = vrot.slane %v2714_v2, 1  ;;  %v415_v32 = vmul.f32 0.2, %v271_v16 }
  0x4d   : > { %vm343_vm12 = vcmp.gt.f32.partialorder %v271_v16, 0.0  ;;  %vm3990_vm5 = vcmask 64512   ;;  %vm1061_vm6 = vcmask 97280   ;;  %vm1070_vm7 = vcmask 130048  }
  0x4e   : > { %645 = vrot.lane.b32.xlu2 %v2683_v44, %s2465_s24  ;;  %v261_v44 = vld [vmem:[%s2518_s21 + $0x178] sm:$0x1]  ;;  %vm1088_vm10 = vcmask 195584  }
  0x4f   : > { %643 = vrot.lane.b32.xlu1 %v2680_v43, %s2465_s24  ;;  %v405_v52 = vmul.f32 0.2, %v261_v44  ;;  %vm333_vm11 = vcmp.gt.f32.partialorder %v261_v44, 0.0  ;;  %v277_v43 = vld [vmem:[%s2518_s21 + $0x1f8] sm:$0x1] }
  0x50   : > { %641 = vrot.lane.b32.xlu0 %v2686_v45, %s2465_s24  ;;  %vm349_vm15 = vcmp.gt.f32.partialorder %v277_v43, 0.0 }
  0x51   : > { %v477_v0 = vsel %vm333_vm11, %v261_v44, %v405_v52  ;;  %v413_v52 = vmul.f32 0.2, %v269_v29  ;;  %vm1097_vm11 = vcmask 228352  }
  0x52   : > { %v743_v30 = vrot.slane %v477_v0, 1 }
  0x56   : > { %667 = vrot.lane.b32.xlu2 %v2699_v56, %s2466_s25 }
  0x57   : > { %665 = vrot.lane.b32.xlu1 %v2697_v55, %s2466_s25 }
  0x58   : > { %663 = vrot.lane.b32.xlu0 %v2701_v57, %s2466_s25  ;;  %v729_v57 = vsel %vm550_vm8, %v727_v33, %v728_v34  ;;  %v736_v33 = vrot.slane %v2716_v3, 1  ;;  %v407_v34 = vmul.f32 0.2, %v263_v17 }
  0x5a   : > { %v2801_v53 = vsel %vm550_vm8, %v736_v33, %v737_v20  ;;  %v748_v33 = vrot.slane %v2727_v21, 1 }
  0x5e   : > { %673 = vrot.lane.b32.xlu2 %v2714_v2, %s2466_s25 }
  0x5f   : > { %671 = vrot.lane.b32.xlu1 %v2712_v1, %s2466_s25 }
  0x60   : > { %669 = vrot.lane.b32.xlu0 %v2716_v3, %s2466_s25 }
  0x66   : > { %695 = vrot.lane.b32.xlu2 %v2729_v22, %s2467_s26 }
  0x67   : > { %677 = vrot.lane.b32.xlu1 %v2727_v21, %s2466_s25  ;;  %v485_v21 = vsel %vm341_vm14, %v269_v29, %v413_v52  ;;  %v783_v29 = vrot.slane %v2729_v22, 1  ;;  %vm3992_vm14 = vcmask 326656  }
  0x68   : > { %675 = vrot.lane.b32.xlu0 %v2731_v27, %s2466_s25  ;;  %v279_v27 = vld [vmem:[%s2518_s21 + $0x208] sm:$0x1] }
  0x69   : > { %vm351_vm0 = vcmp.gt.f32.partialorder %v279_v27, 0.0 }
  0x6e   : > { %701 = vrot.lane.b32.xlu2 %v2744_v39, %s2467_s26 }
  0x6f   : > { %699 = vrot.lane.b32.xlu1 %v2742_v38, %s2467_s26 }
  0x70   : > { %697 = vrot.lane.b32.xlu0 %v2746_v47, %s2467_s26  ;;  %v2759_v62 = vpop.permute.xlu2 %518 }
  0x76   : > { %707 = vrot.lane.b32.xlu2 %v2763_v12, %s2467_s26 }
  0x77   : > { %705 = vrot.lane.b32.xlu1 %v2761_v4, %s2467_s26 }
  0x78   : > { %703 = vrot.lane.b32.xlu0 %v2765_v14, %s2467_s26  ;;  %v2779_v51 = vpop.permute.xlu2 %520 }
  0x7e   : > { %753 = vrot.lane.b32.xlu2 %v2783_v11, %s2468_s27 }
  0x7f   : > { %751 = vrot.lane.b32.xlu1 %v729_v57, %s2468_s27  ;;  %v479_v57 = vsel %vm335_vm9, %v263_v17, %v407_v34  ;;  %v749_v17 = vrot.slane %v481_v63, 1  ;;  %vm1079_vm9 = vcmask 162816  }
  0x80   : > { %709 = vrot.lane.b32.xlu0 %v2785_v61, %s2467_s26  ;;  %v2798_v31 = vpop.permute.xlu2 %575  ;;  %v746_v20 = vrot.slane %v479_v57, 1 }
  0x81   : > { %4005 = vst [vmem:[#allocation12_spill] sm:$0xff] %v2798_v31  ;;  %v273_v31 = vld [vmem:[%s2518_s21 + $0x1d8] sm:$0x1]  ;;  %v2831_v63 = vsel %vm550_vm8, %v748_v33, %v749_v17  ;;  %v786_v33 = vrot.slane %v2746_v47, 1 }
  0x82   : > { %v417_v34 = vmul.f32 0.2, %v273_v31  ;;  %vm345_vm13 = vcmp.gt.f32.partialorder %v273_v31, 0.0  ;;  %v2828_v57 = vsel %vm550_vm8, %v745_v60, %v746_v20  ;;  %4010 = vst [vmem:[#allocation17_spill] sm:$0xff] %v2831_v63  ;;  %v789_v60 = vrot.slane %v2742_v38, 1 }
  0x83   : > { %4009 = vst [vmem:[#allocation16_spill] sm:$0xff] %v2828_v57 }
  0x84   : > { %v489_v0 = vsel %vm345_vm13, %v273_v31, %v417_v34  ;;  %vm3993_vm13 = vcmask 293888  }
  0x86   : > { %759 = vrot.lane.b32.xlu2 %v2804_v54, %s2468_s27 }
  0x87   : > { %757 = vrot.lane.b32.xlu1 %v2801_v53, %s2468_s27 }
  0x88   : > { %755 = vrot.lane.b32.xlu0 %v2807_v58, %s2468_s27  ;;  %v2823_v28 = vpop.permute.xlu2 %581 }
  0x89   : > { %v2821_v44 = vpop.permute.xlu1 %514  ;;  %4007 = vst [vmem:[#allocation14_spill] sm:$0xff] %v2823_v28  ;;  %v487_v28 = vsel %vm343_vm12, %v271_v16, %v415_v32  ;;  %v790_v16 = vrot.slane %v489_v0, 1  ;;  %v423_v32 = vmul.f32 0.2, %v279_v27  ;;  %vm3995_vm12 = vcmask 261120  }
  0x8a   : > { %4006 = vst [vmem:[#allocation13_spill] sm:$0xff] %v2821_v44  ;;  %v2825_v48 = vpop.permute.xlu0 %510  ;;  %v2834_v44 = vsel %vm550_vm8, %v742_v40, %v743_v30  ;;  %v787_v20 = vrot.slane %v487_v28, 1  ;;  %v784_v40 = vrot.slane %v485_v21, 1  ;;  %v421_v30 = vmul.f32 0.2, %v277_v43 }
  0x8b   : > { %4008 = vst [vmem:[#allocation15_spill] sm:$0xff] %v2825_v48  ;;  %v275_v48 = vld [vmem:[%s2518_s21 + $0x1e8] sm:$0x1]  ;;  %v2858_v22 = vsel %vm550_vm8, %v789_v60, %v790_v16 }
  0x8c   : > { %v419_v52 = vmul.f32 0.2, %v275_v48  ;;  %vm347_vm1 = vcmp.gt.f32.partialorder %v275_v48, 0.0  ;;  %v2855_v28 = vsel %vm550_vm8, %v786_v33, %v787_v20  ;;  %v785_v0 = vsel %vm550_vm8, %v783_v29, %v784_v40 }
  0x8d   : > { %v798_v33 = vrot.slane %v2761_v4, 1  ;;  %v795_v20 = vrot.slane %v2765_v14, 1 }
  0x8e   : > { %765 = vrot.lane.b32.xlu2 %v2831_v63, %s2468_s27  ;;  %v495_v63 = vsel %vm351_vm0, %v279_v27, %v423_v32  ;;  %v491_v21 = vsel %vm347_vm1, %v275_v48, %v419_v52  ;;  %vm1142_vm0 = vcmask 392192   ;;  %vm1151_vm1 = vcmask 424960  }
  0x8f   : > { %763 = vrot.lane.b32.xlu1 %v2828_v57, %s2468_s27  ;;  %v283_v57 = vld [vmem:[%s2518_s21 + $0x228] sm:$0x1]  ;;  %v799_v16 = vrot.slane %v495_v63, 1  ;;  %v793_v29 = vrot.slane %v491_v21, 1  ;;  %v804_v21 = vrot.slane %v2785_v61, 1 }
  0x90   : > { %761 = vrot.lane.b32.xlu0 %v2834_v44, %s2468_s27  ;;  %v2850_v17 = vpop.permute.xlu2 %587  ;;  %v427_v40 = vmul.f32 0.2, %v283_v57  ;;  %vm355_vm2 = vcmp.gt.f32.partialorder %v283_v57, 0.0 }
  0x91   : > { %v2848_v31 = vpop.permute.xlu1 %516 }
  0x92   : > { %4011 = vst [vmem:[#allocation18_spill] sm:$0xff] %v2848_v31  ;;  %v2852_v34 = vpop.permute.xlu0 %512  ;;  %v493_v31 = vsel %vm349_vm15, %v277_v43, %v421_v30  ;;  %v792_v43 = vrot.slane %v2744_v39, 1  ;;  %vm3991_vm15 = vcmask 359424  }
  0x93   : > { %4012 = vst [vmem:[#allocation19_spill] sm:$0xff] %v2852_v34  ;;  %v281_v34 = vld [vmem:[%s2518_s21 + $0x218] sm:$0x1]  ;;  %v796_v60 = vrot.slane %v493_v31, 1  ;;  %v499_v31 = vsel %vm355_vm2, %v283_v57, %v427_v40  ;;  %vm1160_vm2 = vcmask 457728  }
  0x94   : > { %v425_v32 = vmul.f32 0.2, %v281_v34  ;;  %vm353_vm3 = vcmp.gt.f32.partialorder %v281_v34, 0.0  ;;  %v2884_v63 = vsel %vm550_vm8, %v792_v43, %v793_v29 }
  0x95   : > { %v2878_v52 = vsel %vm550_vm8, %v795_v20, %v796_v60  ;;  %v805_v20 = vrot.slane %v499_v31, 1 }
  0x96   : > { %811 = vrot.lane.b32.xlu2 %v2858_v22, %s2469_s28  ;;  %v497_v36 = vsel %vm353_vm3, %v281_v34, %v425_v32  ;;  %vm1169_vm3 = vcmask 490496  }
  0x97   : > { %809 = vrot.lane.b32.xlu1 %v2855_v28, %s2469_s28  ;;  %v802_v57 = vrot.slane %v497_v36, 1  ;;  %v2901_v43 = vsel %vm550_vm8, %v804_v21, %v805_v20 }
  0x98   : > { %807 = vrot.lane.b32.xlu0 %v785_v0, %s2469_s28  ;;  %v2873_v48 = vpop.permute.xlu2 %633  ;;  %v2881_v0 = vsel %vm550_vm8, %v798_v33, %v799_v16  ;;  %v801_v33 = vrot.slane %v2763_v12, 1 }
  0x99   : > { %v2871_v27 = vpop.permute.xlu1 %524 }
  0x9a   : > { %v2875_v30 = vpop.permute.xlu0 %522  ;;  %v2904_v29 = vsel %vm550_vm8, %v801_v33, %v802_v57 }
  0x9e   : > { %817 = vrot.lane.b32.xlu2 %v2881_v0, %s2469_s28 }
  0x9f   : > { %815 = vrot.lane.b32.xlu1 %v2878_v52, %s2469_s28 }
  0xa0   : > { %813 = vrot.lane.b32.xlu0 %v2884_v63, %s2469_s28  ;;  %v2896_v16 = vpop.permute.xlu2 %639 }
  0xa1   : > { %v2894_v60 = vpop.permute.xlu1 %579 }
  0xa2   : > { %v2898_v34 = vpop.permute.xlu0 %577 }
  0xa6   : > { %832 = vrot.lane.b32.xlu2 %v2571_v46, %s2470_s29 }
  0xa7   : > { %821 = vrot.lane.b32.xlu1 %v2901_v43, %s2469_s28 }
  0xa8   : > { %819 = vrot.lane.b32.xlu0 %v2904_v29, %s2469_s28  ;;  %v2914_v36 = vpop.permute.xlu2 %645 }
  0xa9   : > { %v2912_v40 = vpop.permute.xlu1 %585 }
  0xaa   : > { %v2916_v32 = vpop.permute.xlu0 %583 }
  0xae   : > { %838 = vrot.lane.b32.xlu2 %v2605_v15, %s2470_s29 }
  0xaf   : > { %836 = vrot.lane.b32.xlu1 %v2576_v50, %s2470_s29 }
  0xb0   : > { %834 = vrot.lane.b32.xlu0 %v2568_v41, %s2470_s29  ;;  %v2926_v21 = vpop.permute.xlu2 %667 }
  0xb1   : > { %v2924_v31 = vpop.permute.xlu1 %631  ;;  %4013 = vst [vmem:[#allocation20_spill] sm:$0xff] %v2926_v21 }
  0xb2   : > { %v2928_v20 = vpop.permute.xlu0 %589 }
  0xb6   : > { %857 = vrot.lane.b32.xlu2 %v2547_v23, %s2471_s30 }
  0xb7   : > { %842 = vrot.lane.b32.xlu1 %v2603_v13, %s2470_s29 }
  0xb8   : > { %840 = vrot.lane.b32.xlu0 %v2601_v10, %s2470_s29  ;;  %v2938_v57 = vpop.permute.xlu2 %673 }
  0xb9   : > { %v2936_v33 = vpop.permute.xlu1 %637 }
  0xba   : > { %4014 = vst [vmem:[#allocation21_spill] sm:$0xff] %v2936_v33  ;;  %v2940_v50 = vpop.permute.xlu0 %635 }
  0xbe   : > { %938 = vrot.lane.b32.xlu2 %v2697_v55, %s2473_s6 }
  0xbf   : > { %913 = vrot.lane.b32.xlu1 %v2645_v59, %s2472_s5 }
  0xc0   : > { %885 = vrot.lane.b32.xlu0 %v2595_v6, %s2474_s7  ;;  %v2950_v21 = vpop.permute.xlu2 %695 }
  0xc1   : > { %v2948_v23 = vpop.permute.xlu1 %643 }
  0xc2   : > { %v642_v33 = vpop.permute.xlu0 %641 }
  0xc6   : > { %1019 = vrot.lane.b32.xlu2 %v2855_v28, %s2476_s9 }
  0xc7   : > { %991 = vrot.lane.b32.xlu1 %v2783_v11, %s2475_s8 }
  0xc8   : > { %963 = vrot.lane.b32.xlu0 %v2746_v47, %s2477_s10  ;;  %v2960_v6 = vpop.permute.xlu2 %701 }
  0xc9   : > { %v2958_v59 = vpop.permute.xlu1 %665  ;;  %4015 = vst [vmem:[#allocation22_spill] sm:$0xff] %v2960_v6 }
  0xca   : > { %v2962_v55 = vpop.permute.xlu0 %663 }
  0xce   : > { %915 = vrot.lane.b32.xlu2 %v2668_v26, %s2472_s5 }
  0xcf   : > { %887 = vrot.lane.b32.xlu1 %v2592_v5, %s2474_s7 }
  0xd0   : > { %859 = vrot.lane.b32.xlu0 %v2527_v9, %s2471_s30  ;;  %v2972_v28 = vpop.permute.xlu2 %707 }
  0xd1   : > { %v2970_v11 = vpop.permute.xlu1 %671 }
  0xd2   : > { %v2974_v47 = vpop.permute.xlu0 %669 }
  0xd6   : > { %993 = vrot.lane.b32.xlu2 %v2807_v58, %s2475_s8 }
  0xd7   : > { %965 = vrot.lane.b32.xlu1 %v2742_v38, %s2477_s10 }
  0xd8   : > { %940 = vrot.lane.b32.xlu0 %v2699_v56, %s2473_s6  ;;  %v2984_v26 = vpop.permute.xlu2 %753 }
  0xd9   : > { %v2982_v5 = vpop.permute.xlu1 %677 }
  0xda   : > { %v2986_v9 = vpop.permute.xlu0 %675 }
  0xde   : > { %889 = vrot.lane.b32.xlu2 %v2598_v7, %s2474_s7 }
  0xdf   : > { %861 = vrot.lane.b32.xlu1 %v2543_v19, %s2471_s30 }
  0xe0   : > { %1021 = vrot.lane.b32.xlu0 %v2858_v22, %s2476_s9  ;;  %v760_v58 = vpop.permute.xlu2 %759 }
  0xe1   : > { %v2994_v38 = vpop.permute.xlu1 %699 }
  0xe2   : > { %v2996_v6 = vpop.permute.xlu0 %697 }
  0xe6   : > { %967 = vrot.lane.b32.xlu2 %v2744_v39, %s2477_s10 }
  0xe7   : > { %942 = vrot.lane.b32.xlu1 %v2716_v3, %s2473_s6 }
  0xe8   : > { %917 = vrot.lane.b32.xlu0 %v2662_v24, %s2472_s5  ;;  %v3004_v56 = vpop.permute.xlu2 %765 }
  0xe9   : > { %v706_v19 = vpop.permute.xlu1 %705 }
  0xea   : > { %v704_v7 = vpop.permute.xlu0 %703 }
  0xee   : > { %863 = vrot.lane.b32.xlu2 %v2525_v8, %s2471_s30 }
  0xef   : > { %1023 = vrot.lane.b32.xlu1 %v2884_v63, %s2476_s9 }
  0xf0   : > { %995 = vrot.lane.b32.xlu0 %v2801_v53, %s2475_s8  ;;  %v3014_v22 = vpop.permute.xlu2 %811  ;;  %v1049_v53 = vsel %vm3989_vm4, %v2601_v10, %v2779_v51 }
  0xf1   : > { %v3012_v3 = vpop.permute.xlu1 %751 }
  0xf2   : > { %v3016_v39 = vpop.permute.xlu0 %709 }
  0xf6   : > { %944 = vrot.lane.b32.xlu2 %v2712_v1, %s2473_s6 }
  0xf7   : > { %919 = vrot.lane.b32.xlu1 %v2665_v25, %s2472_s5  ;;  %v1058_v25 = vsel %vm3990_vm5, %v1049_v53, %v2912_v40 }
  0xf8   : > { %891 = vrot.lane.b32.xlu0 %v2627_v37, %s2474_s7  ;;  %v818_v8 = vpop.permute.xlu2 %817  ;;  %v1067_v1 = vsel %vm1061_vm6, %v1058_v25, %v642_v33  ;;  %v1183_v25 = vld [vmem:[%s3974_s1 + $0x28] sm:$0xff] }
  0xf9   : > { %v3024_v24 = vpop.permute.xlu1 %757  ;;  %v1076_v10 = vsel %vm1070_vm7, %v1067_v1, %v2938_v57 }
  0xfa   : > { %v3026_v63 = vpop.permute.xlu0 %755  ;;  %v1085_v40 = vsel %vm1079_vm9, %v1076_v10, %v706_v19  ;;  %v1181_v10 = vld [vmem:[%s3974_s1 + $0x18] sm:$0xff] }
  0xfe   : > { %1025 = vrot.lane.b32.xlu2 %v2878_v52, %s2476_s9 }
  0xff   : > { %997 = vrot.lane.b32.xlu1 %v2804_v54, %s2475_s8 }
 0x100   : > { %969 = vrot.lane.b32.xlu0 %v2765_v14, %s2477_s10  ;;  %v3042_v51 = vpop.permute.xlu2 %832  ;;  %v1048_v14 = vsel %vm3989_vm4, %v2605_v15, %v2759_v62  ;;  %v1051_v62 = vsel %vm3989_vm4, %v2629_v42, %v2871_v27 }
 0x101   : > { %v764_v37 = vpop.permute.xlu1 %763  ;;  %v1057_v57 = vsel %vm3990_vm5, %v1048_v14, %v2916_v32  ;;  %v1050_v32 = vsel %vm3989_vm4, %v2603_v13, %v2875_v30  ;;  %v1179_v14 = vld [vmem:[%s3974_s1 + $0x8] sm:$0xff] }
 0x102   : > { %v762_v33 = vpop.permute.xlu0 %761  ;;  %v1059_v13 = vsel %vm3990_vm5, %v1050_v32, %v2850_v17  ;;  %v4021_v32 = vld [vmem:[#allocation12_spill] sm:$0xff] }
 0x103   : > { %v1094_v54 = vsel %vm1088_vm10, %v1085_v40, %v762_v33  ;;  %v4016_v40 = vld [vmem:[#allocation6_spill] sm:$0xff] }
 0x104   : > { %v3047_v52 = vsel %vm1097_vm11, %v1094_v54, %v818_v8 }
 0x106   : > { %921 = vrot.lane.b32.xlu2 %v2686_v45, %s2472_s5  ;;  %v1066_v45 = vsel %vm1061_vm6, %v1057_v57, %v2896_v16  ;;  %v1184_v16 = vld [vmem:[%s3974_s1 + $0x30] sm:$0xff] }
 0x107   : > { %893 = vrot.lane.b32.xlu1 %v2621_v35, %s2474_s7  ;;  %v1185_v35 = vld [vmem:[%s3974_s1 + $0x38] sm:$0xff] }
 0x108   : > { %865 = vrot.lane.b32.xlu0 %v2541_v18, %s2471_s30  ;;  %v3062_v8 = vpop.permute.xlu2 %838  ;;  %1219 = vmatpush.msra.mxu0 %v1185_v35  ;;  %v1075_v18 = vsel %vm1070_vm7, %v1066_v45, %v2970_v11 }
 0x109   : > { %v3060_v19 = vpop.permute.xlu1 %809  ;;  %v1084_v15 = vsel %vm1079_vm9, %v1075_v18, %v704_v7 }
 0x10a   : > { %v3064_v53 = vpop.permute.xlu0 %807  ;;  %1220 = vmatpush.msra.mxu0 %v1184_v16 }
 0x10c   : > { %1221 = vmatpush.msra.mxu0 %v1183_v25 }
 0x10e   : > { %999 = vrot.lane.b32.xlu2 %v2834_v44, %s2475_s8  ;;  %v1093_v44 = vsel %vm1088_vm10, %v1084_v15, %v760_v58  ;;  %v1068_v58 = vsel %vm1061_vm6, %v1059_v13, %v2948_v23  ;;  %v1180_v23 = vld [vmem:[%s3974_s1 + $0x10] sm:$0xff]  ;;  %v4019_v15 = vld [vmem:[#allocation15_spill] sm:$0xff] }
 0x10f   : > { %971 = vrot.lane.b32.xlu1 %v2761_v4, %s2477_s10  ;;  %v1060_v4 = vsel %vm3990_vm5, %v1051_v62, %v2928_v20  ;;  %v1182_v20 = vld [vmem:[%s3974_s1 + $0x20] sm:$0xff]  ;;  %v1077_v17 = vsel %vm1070_vm7, %v1068_v58, %v2986_v9  ;;  %v4025_v58 = vld [vmem:[#allocation4_spill] sm:$0xff] }
 0x110   : > { %946 = vrot.lane.b32.xlu0 %v2714_v2, %s2473_s6  ;;  %v3092_v7 = vpop.permute.xlu2 %857  ;;  %v1069_v30 = vsel %vm1061_vm6, %v1060_v4, %v2914_v36  ;;  %1222 = vmatpush.msra.mxu0 %v1182_v20  ;;  %v4020_v62 = vld [vmem:[#allocation3_spill] sm:$0xff]  ;;  %v4022_v4 = vld [vmem:[#allocation16_spill] sm:$0xff] }
 0x111   : > { %v816_v11 = vpop.permute.xlu1 %815  ;;  %v1078_v1 = vsel %vm1070_vm7, %v1069_v30, %v2982_v5  ;;  %v1086_v5 = vsel %vm1079_vm9, %v1077_v17, %v2972_v28  ;;  %v1178_v28 = vld [vmem:[%s3974_s1] sm:$0xff]  ;;  %v1044_v16 = vsel %vm3989_vm4, %v4020_v62, %v4019_v15 }
 0x112   : > { %v3095_v27 = vsel %vm1097_vm11, %v1093_v44, %v816_v11  ;;  %v3097_v2 = vpop.permute.xlu0 %813  ;;  %v1087_v36 = vsel %vm1079_vm9, %v1078_v1, %v3016_v39  ;;  %1223 = vmatpush.msra.mxu0 %v1181_v10  ;;  %v4023_v20 = vld [vmem:[#allocation7_spill] sm:$0xff] }
 0x113   : > { %v1096_v39 = vsel %vm1088_vm10, %v1087_v36, %v3004_v56  ;;  %v4017_v56 = vld [vmem:[#allocation11_spill] sm:$0xff] }
 0x114   : > { %1224 = vmatpush.msra.mxu0 %v1180_v23  ;;  %v230_v36 = vld [vmem:[%s2518_s21 + $0x80] sm:$0xff]  ;;  %v249_v23 = vld [vmem:[%s2518_s21 + $0x118] sm:$0x1] }
 0x116   : > { %895 = vrot.lane.b32.xlu2 %v4016_v40, %s2474_s7  ;;  %1225 = vmatpush.msra.mxu0 %v1179_v14  ;;  %v248_v40 = vld [vmem:[%s2518_s21 + $0x110] sm:$0xff]  ;;  %v374_v14 = vmul.f32 0.2, %v230_v36 }
 0x117   : > { %867 = vrot.lane.b32.xlu1 %v2574_v49, %s2471_s30  ;;  %v1095_v49 = vsel %vm1088_vm10, %v1086_v5, %v764_v37  ;;  %v4018_v37 = vld [vmem:[#allocation8_spill] sm:$0xff]  ;;  %v4026_v5 = vld [vmem:[#allocation19_spill] sm:$0xff] }
 0x118   : > { %1027 = vrot.lane.b32.xlu0 %v2881_v0, %s2476_s9  ;;  %v3133_v33 = vpop.permute.xlu2 %938  ;;  %1226 = vmatpush.msra.mxu0 %v1178_v28 }
 0x119   : > { %v822_v9 = vpop.permute.xlu1 %821 }
 0x11a   : > { %v3137_v54 = vsel %vm1097_vm11, %v1096_v39, %v822_v9  ;;  %v820_v0 = vpop.permute.xlu0 %819  ;;  %v1045_v9 = vsel %vm3989_vm4, %v2571_v46, %v4026_v5  ;;  %vm302_vm4 = vcmp.gt.f32.partialorder %v230_v36, 0.0 }
 0x11b   : > { %v3143_v57 = vsel %vm1097_vm11, %v1095_v49, %v820_v0  ;;  %v4027_v49 = vld [vmem:[#allocation17_spill] sm:$0xff]  ;;  %v4028_v0 = vld [vmem:[#allocation10_spill] sm:$0xff] }
 0x11e   : > { %973 = vrot.lane.b32.xlu2 %v2763_v12, %s2477_s10  ;;  %v1053_v12 = vsel %vm3990_vm5, %v1044_v16, %v4021_v32 }
 0x11f   : > { %948 = vrot.lane.b32.xlu1 %v4017_v56, %s2473_s6  ;;  %v1062_v11 = vsel %vm1061_vm6, %v1053_v12, %v2924_v31  ;;  %v393_v56 = vmul.f32 0.2, %v249_v23 }
 0x120   : > { %923 = vrot.lane.b32.xlu0 %v4018_v37, %s2472_s5  ;;  %v1020_v45 = vpop.permute.xlu2 %1019  ;;  %v1071_v13 = vsel %vm1070_vm7, %v1062_v11, %v2962_v55  ;;  %v4024_v55 = vld [vmem:[#allocation9_spill] sm:$0xff] }
 0x121   : > { %v3154_v35 = vpop.permute.xlu1 %836 }
 0x122   : > { %v3156_v18 = vpop.permute.xlu0 %834 }
 0x126   : > { %844 = vrot.lane.b32.xlu2 %v2629_v42, %s2470_s29  ;;  %v1080_v42 = vsel %vm1079_vm9, %v1071_v13, %v2950_v21 }
 0x127   : > { %1029 = vrot.lane.b32.xlu1 %v2904_v29, %s2476_s9  ;;  %v1089_v30 = vsel %vm1088_vm10, %v1080_v42, %v3012_v3 }
 0x128   : > { %1001 = vrot.lane.b32.xlu0 %v4022_v4, %s2475_s8  ;;  %v3173_v25 = vpop.permute.xlu2 %915  ;;  %v1098_v31 = vsel %vm1097_vm11, %v1089_v30, %v3064_v53  ;;  %v446_v4 = vsel %vm302_vm4, %v230_v36, %v374_v14  ;;  %v266_v30 = vld [vmem:[%s2518_s21 + $0x1a0] sm:$0xff] }
 0x129   : > { %v3171_v44 = vpop.permute.xlu1 %842  ;;  %v1107_v53 = vsel %vm3995_vm12, %v1098_v31, %v3042_v51  ;;  %v231_v51 = vld [vmem:[%s2518_s21 + $0x88] sm:$0x1]  ;;  %vm338_vm4 = vcmp.gt.f32.partialorder %v266_v30, 0.0 }
 0x12a   : > { %v3177_v29 = vpop.permute.xlu0 %840  ;;  %v1116_v10 = vsel %vm3993_vm13, %v1107_v53, %v3092_v7  ;;  %v1054_v7 = vsel %vm3990_vm5, %v1045_v9, %v2898_v34  ;;  %v375_v62 = vmul.f32 0.2, %v231_v51  ;;  %vm320_vm5 = vcmp.gt.f32.partialorder %v248_v40, 0.0  ;;  %v267_v31 = vld [vmem:[%s2518_s21 + $0x1a8] sm:$0x1] }
 0x12b   : > { %v1063_v34 = vsel %vm1061_vm6, %v1054_v7, %v2873_v48  ;;  %vm303_vm13 = vcmp.gt.f32.partialorder %v231_v51, 0.0 }
 0x12c   : > { %v1072_v32 = vsel %vm1070_vm7, %v1063_v34, %v2958_v59  ;;  %v447_v48 = vsel %vm303_vm13, %v231_v51, %v375_v62  ;;  %v4032_v62 = vld [vmem:[#allocation13_spill] sm:$0xff] }
 0x12d   : > { %v883_v53 = vrot.slane %v447_v48, 1 }
 0x12e   : > { %925 = vrot.lane.b32.xlu2 %v4024_v55, %s2472_s5  ;;  %v410_v55 = vmul.f32 0.2, %v266_v30 }
 0x12f   : > { %897 = vrot.lane.b32.xlu1 %v4023_v20, %s2474_s7  ;;  %v284_v20 = vld [vmem:[%s2518_s21 + $0x230] sm:$0xff] }
 0x130   : > { %869 = vrot.lane.b32.xlu0 %v4025_v58, %s2471_s30  ;;  %v3191_v3 = vpop.permute.xlu2 %993  ;;  %v882_v58 = vrot.slane %v446_v4, 1  ;;  %vm356_vm13 = vcmp.gt.f32.partialorder %v284_v20, 0.0  ;;  %v482_v5 = vsel %vm338_vm4, %v266_v30, %v410_v55  ;;  %vm4031_vm4 = vcmask 359424  }
 0x131   : > { %v914_v21 = vpop.permute.xlu1 %913 }
 0x132   : > { %v886_v1 = vpop.permute.xlu0 %885  ;;  %v884_v51 = vsel %vm550_vm8, %v882_v58, %v883_v53  ;;  %v4040_v58 = vld [vmem:[#allocation18_spill] sm:$0xff] }
 0x133   : > { %v1125_v17 = vsel %vm3992_vm14, %v1116_v10, %v886_v1  ;;  %vm3994_vm14 = vcmask 523264   ;;  %v411_v1 = vmul.f32 0.2, %v267_v31 }
 0x134   : > { %v1134_v39 = vsel %vm3991_vm15, %v1125_v17, %v914_v21  ;;  %vm321_vm15 = vcmp.gt.f32.partialorder %v249_v23, 0.0 }
 0x135   : > { %v1143_v15 = vsel %vm1142_vm0, %v1134_v39, %v3133_v33  ;;  %v1081_v33 = vsel %vm1079_vm9, %v1072_v32, %v2996_v6  ;;  %v465_v42 = vsel %vm321_vm15, %v249_v23, %v393_v56  ;;  %vm4029_vm15 = vcmask 293888  }
 0x136   : > { %1003 = vrot.lane.b32.xlu2 %v4027_v49, %s2475_s8  ;;  %v1090_v59 = vsel %vm1088_vm10, %v1081_v33, %v2984_v26 }
 0x137   : > { %975 = vrot.lane.b32.xlu1 %v2785_v61, %s2477_s10  ;;  %v392_v61 = vmul.f32 0.2, %v248_v40  ;;  %v1099_v10 = vsel %vm1097_vm11, %v1090_v59, %v3060_v19 }
 0x138   : > { %950 = vrot.lane.b32.xlu0 %v4028_v0, %s2473_s6  ;;  %v3214_v28 = vpop.permute.xlu2 %889  ;;  %v1108_v26 = vsel %vm3995_vm12, %v1099_v10, %v3156_v18  ;;  %v988_v0 = vrot.slane %v482_v5, 1  ;;  %vm4030_vm12 = vcmask 326656  }
 0x139   : > { %v992_v46 = vpop.permute.xlu1 %991  ;;  %v464_v13 = vsel %vm320_vm5, %v248_v40, %v392_v61  ;;  %vm339_vm5 = vcmp.gt.f32.partialorder %v267_v31, 0.0  ;;  %v285_v40 = vld [vmem:[%s2518_s21 + $0x238] sm:$0x1] }
 0x13a   : > { %v964_v37 = vpop.permute.xlu0 %963  ;;  %v910_v6 = vrot.slane %v464_v13, 1  ;;  %v429_v9 = vmul.f32 0.2, %v285_v40  ;;  %v483_v49 = vsel %vm339_vm5, %v267_v31, %v411_v1  ;;  %vm4037_vm5 = vcmask 261120  }
 0x13b   : > { %v1152_v16 = vsel %vm1151_vm1, %v1143_v15, %v964_v37 }
 0x13c   : > { %v1161_v12 = vsel %vm1160_vm2, %v1152_v16, %v992_v46  ;;  %v989_v46 = vrot.slane %v483_v49, 1 }
 0x13d   : > { %v1170_v11 = vsel %vm1169_vm3, %v1161_v12, %v1020_v45  ;;  %v911_v45 = vrot.slane %v465_v42, 1 }
 0x13e   : > { %2367 = vmatmul.msk.f32.vlgmr.msra.gmra.mxu0 %vm3994_vm14, %v1170_v11  ;;  %871 = vrot.lane.b32.xlu2 %v464_v13, %s2471_s30  ;;  %vm357_vm14 = vcmp.gt.f32.partialorder %v285_v40, 0.0  ;;  %v990_v12 = vsel %vm550_vm8, %v988_v0, %v989_v46 }
 0x13f   : > { %846 = vrot.lane.b32.xlu1 %v446_v4, %s2470_s29  ;;  %v912_v23 = vsel %vm550_vm8, %v910_v6, %v911_v45  ;;  %v501_v19 = vsel %vm357_vm14, %v285_v40, %v429_v9  ;;  %vm4033_vm14 = vcmask 31744  }
 0x140   : > { %1031 = vrot.lane.b32.xlu0 %v2901_v43, %s2476_s9  ;;  %v968_v36 = vpop.permute.xlu2 %967  ;;  %v428_v43 = vmul.f32 0.2, %v284_v20  ;;  %v1017_v61 = vrot.slane %v501_v19, 1  ;;  %v1046_v34 = vsel %vm4033_vm14, %v2568_v41, %v4032_v62  ;;  %v4035_v41 = vld [vmem:[#allocation20_spill] sm:$0xff] }
 0x141   : > { %v888_v21 = vpop.permute.xlu1 %887 }
 0x142   : > { %v860_v17 = vpop.permute.xlu0 %859  ;;  %v500_v7 = vsel %vm356_vm13, %v284_v20, %v428_v43  ;;  %vm4038_vm13 = vmmov %vm4029_vm15 }
 0x143   : > { %v1117_v39 = vsel %vm4029_vm15, %v1108_v26, %v860_v17  ;;  %v1016_v14 = vrot.slane %v500_v7, 1  ;;  %vm4039_vm15 = vcmask 326656  }
 0x144   : > { %v1126_v18 = vsel %vm4030_vm12, %v1117_v39, %v888_v21  ;;  %vm4034_vm12 = vcmask 64512   ;;  %v4041_v21 = vld [vmem:[#allocation5_spill] sm:$0xff]  ;;  %v4044_v39 = vld [vmem:[#allocation22_spill] sm:$0xff] }
 0x145   : > { %v1135_v15 = vsel %vm4031_vm4, %v1126_v18, %v3173_v25  ;;  %v1018_v4 = vsel %vm550_vm8, %v1016_v14, %v1017_v61  ;;  %v1055_v33 = vsel %vm4034_vm12, %v1046_v34, %v2894_v60  ;;  %vm4036_vm8 = vcmask 523264  }
 0x146   : > { %952 = vrot.lane.b32.xlu2 %v482_v5, %s2473_s6  ;;  %v1064_v11 = vsel %vm1061_vm6, %v1055_v33, %v2940_v50  ;;  %v1047_v53 = vsel %vm4033_vm14, %v4041_v21, %v4040_v58  ;;  %vm4047_vm14 = vmmov %vm4038_vm13 }
 0x147   : > { %927 = vrot.lane.b32.xlu1 %v912_v23, %s2472_s5  ;;  %v1073_v25 = vsel %vm1070_vm7, %v1064_v11, %v4035_v41 }
 0x148   : > { %899 = vrot.lane.b32.xlu0 %v884_v51, %s2474_s7  ;;  %v864_v32 = vpop.permute.xlu2 %863  ;;  %v1082_v30 = vsel %vm1079_vm9, %v1073_v25, %v2994_v38 }
 0x149   : > { %v966_v56 = vpop.permute.xlu1 %965  ;;  %v1091_v50 = vsel %vm1088_vm10, %v1082_v30, %v3026_v63 }
 0x14a   : > { %v941_v37 = vpop.permute.xlu0 %940  ;;  %v1100_v59 = vsel %vm1097_vm11, %v1091_v50, %v3014_v22  ;;  %v4042_v22 = vld [vmem:[#allocation14_spill] sm:$0xff] }
 0x14b   : > { %v1144_v16 = vsel %vm1142_vm0, %v1135_v15, %v941_v37  ;;  %v1109_v45 = vsel %vm4037_vm5, %v1100_v59, %v3154_v35  ;;  %v1056_v10 = vsel %vm4034_vm12, %v1047_v53, %v4042_v22  ;;  %v4043_v35 = vld [vmem:[#allocation21_spill] sm:$0xff]  ;;  %vm4048_vm12 = vmmov %vm4039_vm15 }
 0x14c   : > { %v1153_v13 = vsel %vm1151_vm1, %v1144_v16, %v966_v56  ;;  %v1065_v26 = vsel %vm1061_vm6, %v1056_v10, %v4043_v35 }
 0x14d   : > { %v1162_v60 = vsel %vm1160_vm2, %v1153_v13, %v3191_v3  ;;  %v1074_v40 = vsel %vm1070_vm7, %v1065_v26, %v2974_v47 }
 0x14e   : > { %1033 = vrot.lane.b32.xlu2 %v1018_v4, %s2476_s9  ;;  %v1083_v51 = vsel %vm1079_vm9, %v1074_v40, %v4044_v39  ;;  %vm4045_vm9 = vmmov %vm4036_vm8 }
 0x14f   : > { %1005 = vrot.lane.b32.xlu1 %v990_v12, %s2475_s8  ;;  %v1092_v49 = vsel %vm1088_vm10, %v1083_v51, %v3024_v24 }
 0x150   : > { %977 = vrot.lane.b32.xlu0 %v500_v7, %s2477_s10  ;;  %v945_v6 = vpop.permute.xlu2 %944  ;;  %v1101_v19 = vsel %vm1097_vm11, %v1092_v49, %v3097_v2  ;;  %vm4046_vm11 = vmmov %vm4037_vm5 }
 0x151   : > { %v862_v42 = vpop.permute.xlu1 %861  ;;  %v1110_v47 = vsel %vm4037_vm5, %v1101_v19, %v3062_v8  ;;  %v1111_v16 = vsel %vm4046_vm11, %v3095_v27, %v3177_v29  ;;  %vm4050_vm5 = vmmov %vm4045_vm9 }
 0x152   : > { %v1022_v48 = vpop.permute.xlu0 %1021  ;;  %v1118_v38 = vsel %vm4038_vm13, %v1109_v45, %v862_v42  ;;  %v1119_v18 = vsel %vm4038_vm13, %v1110_v47, %v864_v32  ;;  %vm4051_vm13 = vmmov %vm4046_vm11  ;;  %vm1261_vm11 = vcmask 58368  }
 0x153   : > { %v1171_v31 = vsel %vm1169_vm3, %v1162_v60, %v1022_v48  ;;  %v1127_v3 = vsel %vm4039_vm15, %v1118_v38, %v3214_v28  ;;  %v1112_v29 = vsel %vm4051_vm13, %v3047_v52, %v3171_v44  ;;  %v2478_v44 = vmov 0.0  }
 0x154   : > { %2368 = vmatmul.msk.f32.gmra.mxu0 %vm4036_vm8, %v1171_v31  ;;  %1264 = vst.msk [vmem:[#allocation2 + $0x18] sm:$0x3] %vm1261_vm11, %v2478_v44 }
 0x155   : > { %1262 = vst.msk [vmem:[#allocation2 + $0x8] sm:$0x3] %vm1261_vm11, %v2478_v44 }
 0x156   : > { %1266 = vst.msk [vmem:[#allocation2 + $0x28] sm:$0x3] %vm1261_vm11, %v2478_v44 }
 0x157   : > { %1268 = vst.msk [vmem:[#allocation2 + $0x38] sm:$0x3] %vm1261_vm11, %v2478_v44 }
 0x158   : > { %v1026_v17 = vpop.permute.xlu2 %1025  ;;  %1270 = vst.msk [vmem:[#allocation2 + $0x48] sm:$0x3] %vm1261_vm11, %v2478_v44 }
 0x159   : > { %v943_v20 = vpop.permute.xlu1 %942  ;;  %1272 = vst.msk [vmem:[#allocation2 + $0x58] sm:$0x3] %vm1261_vm11, %v2478_v44 }
 0x15a   : > { %v918_v55 = vpop.permute.xlu0 %917  ;;  %1274 = vst.msk [vmem:[#allocation2 + $0x68] sm:$0x3] %vm1261_vm11, %v2478_v44 }
 0x15b   : > { %v1136_v63 = vsel %vm4031_vm4, %v1127_v3, %v918_v55  ;;  %1276 = vst.msk [vmem:[#allocation2 + $0x78] sm:$0x3] %vm1261_vm11, %v2478_v44 }
 0x15c   : > { %v1145_v1 = vsel %vm1142_vm0, %v1136_v63, %v943_v20  ;;  %1278 = vst.msk [vmem:[#allocation2 + $0x88] sm:$0x3] %vm1261_vm11, %v2478_v44 }
 0x15d   : > { %v1154_v23 = vsel %vm1151_vm1, %v1145_v1, %v968_v36  ;;  %1280 = vst.msk [vmem:[#allocation2 + $0x98] sm:$0x3] %vm1261_vm11, %v2478_v44 }
 0x160   : > { %v922_v36 = vpop.permute.xlu2 %921 }
 0x161   : > { %v1024_v43 = vpop.permute.xlu1 %1023 }
 0x162   : > { %v996_v28 = vpop.permute.xlu0 %995 }
 0x163   : > { %v1163_v5 = vsel %vm1160_vm2, %v1154_v23, %v996_v28 }
 0x164   : > { %v1172_v9 = vsel %vm1169_vm3, %v1163_v5, %v1024_v43 }
 0x165   : > { %2369 = vmatmul.msk.f32.gmra.mxu0 %vm4036_vm8, %v1172_v9  ;;  %vm4049_vm8 = vmmov %vm4031_vm4 }
 0x168   : > { %v1000_v15 = vpop.permute.xlu2 %999 }
 0x169   : > { %v920_v7 = vpop.permute.xlu1 %919 }
 0x16a   : > { %v892_v0 = vpop.permute.xlu0 %891 }
 0x16b   : > { %v1128_v14 = vsel %vm4039_vm15, %v1119_v18, %v892_v0  ;;  %vm4052_vm15 = vmmov %vm4047_vm14 }
 0x16c   : > { %v1137_v46 = vsel %vm4031_vm4, %v1128_v14, %v920_v7  ;;  %vm4053_vm4 = vmmov %vm4048_vm12 }
 0x16d   : > { %v1146_v37 = vsel %vm1142_vm0, %v1137_v46, %v945_v6 }
 0x170   : > { %v896_v12 = vpop.permute.xlu2 %895 }
 0x171   : > { %v998_v61 = vpop.permute.xlu1 %997 }
 0x172   : > { %v970_v56 = vpop.permute.xlu0 %969 }
 0x173   : > { %v1155_v24 = vsel %vm1151_vm1, %v1146_v37, %v970_v56 }
 0x174   : > { %v1164_v2 = vsel %vm1160_vm2, %v1155_v24, %v998_v61 }
 0x175   : > { %v1173_v62 = vsel %vm1169_vm3, %v1164_v2, %v1026_v17 }
 0x176   : > { %2370 = vmatmul.msk.f32.gmra.mxu0 %vm4045_vm9, %v1173_v62  ;;  %vm4054_vm9 = vmmov %vm4049_vm8 }
 0x178   : > { %v974_v42 = vpop.permute.xlu2 %973 }
 0x179   : > { %v894_v8 = vpop.permute.xlu1 %893 }
 0x17a   : > { %v866_v34 = vpop.permute.xlu0 %865 }
 0x17b   : > { %v1120_v32 = vsel %vm4047_vm14, %v1111_v16, %v866_v34  ;;  %vm4055_vm14 = vmmov %vm4050_vm5 }
 0x17c   : > { %v1129_v4 = vsel %vm4048_vm12, %v1120_v32, %v894_v8  ;;  %vm4056_vm12 = vcmask 64512  }
 0x17d   : > { %v1138_v13 = vsel %vm4049_vm8, %v1129_v4, %v922_v36  ;;  %1263 = vst.msk [vmem:[#allocation2 + $0x10] sm:$0xff] %vm4056_vm12, %v2478_v44  ;;  %vm4057_vm8 = vmmov %vm4056_vm12  ;;  %vm4064_vm12 = vcmask 326656  }
 0x17e   : > { %1260 = vst.msk [vmem:[#allocation2] sm:$0xff] %vm4057_vm8, %v2478_v44 }
 0x180   : > { %v845_v59 = vpop.permute.xlu2 %844 }
 0x181   : > { %v972_v33 = vpop.permute.xlu1 %971 }
 0x182   : > { %v947_v11 = vpop.permute.xlu0 %946 }
 0x183   : > { %v1147_v41 = vsel %vm1142_vm0, %v1138_v13, %v947_v11 }
 0x184   : > { %v1156_v25 = vsel %vm1151_vm1, %v1147_v41, %v972_v33 }
 0x185   : > { %v1165_v60 = vsel %vm1160_vm2, %v1156_v25, %v1000_v15 }
 0x188   : > { %v926_v58 = vpop.permute.xlu2 %925 }
 0x189   : > { %v868_v30 = vpop.permute.xlu1 %867 }
 0x18a   : > { %v1028_v48 = vpop.permute.xlu0 %1027  ;;  %v1121_v50 = vsel %vm4052_vm15, %v1112_v29, %v868_v30  ;;  %vm4060_vm15 = vcmask 261120  }
 0x18b   : > { %v1174_v27 = vsel %vm1169_vm3, %v1165_v60, %v1028_v48  ;;  %v1130_v45 = vsel %vm4053_vm4, %v1121_v50, %v896_v12  ;;  %v1113_v22 = vsel %vm4060_vm15, %v3143_v57, %v845_v59  ;;  %vm4061_vm4 = vcmask 293888  }
 0x18c   : > { %2371 = vmatmul.msk.f32.gmra.mxu0 %vm4050_vm5, %v1174_v27  ;;  %vm4058_vm5 = vmmov %vm4057_vm8  ;;  %v1306_v27 = vld [vmem:[#allocation2 + $0x1] sm:$0xff] }
 0x18d   : > { %1265 = vst.msk [vmem:[#allocation2 + $0x20] sm:$0xff] %vm4058_vm5, %v2478_v44  ;;  %vm4059_vm13 = vmmov %vm4058_vm5 }
 0x18e   : > { %1267 = vst.msk [vmem:[#allocation2 + $0x30] sm:$0xff] %vm4059_vm13, %v2478_v44  ;;  %vm4065_vm8 = vmmov %vm4058_vm5 }
 0x18f   : > { %1273 = vst.msk [vmem:[#allocation2 + $0x60] sm:$0xff] %vm4065_vm8, %v2478_v44  ;;  %vm4067_vm13 = vmmov %vm4065_vm8 }
 0x190   : > { %v1004_v10 = vpop.permute.xlu2 %1003  ;;  %1275 = vst.msk [vmem:[#allocation2 + $0x70] sm:$0xff] %vm4067_vm13, %v2478_v44  ;;  %vm4068_vm15 = vmmov %vm4065_vm8 }
 0x191   : > { %v949_v31 = vpop.permute.xlu1 %948  ;;  %1277 = vst.msk [vmem:[#allocation2 + $0x80] sm:$0xff] %vm4068_vm15, %v2478_v44 }
 0x192   : > { %v924_v6 = vpop.permute.xlu0 %923 }
 0x193   : > { %v1139_v38 = vsel %vm4054_vm9, %v1130_v45, %v924_v6  ;;  %vm4062_vm9 = vmmov %vm4058_vm5 }
 0x194   : > { %v1148_v20 = vsel %vm1142_vm0, %v1139_v38, %v949_v31  ;;  %1269 = vst.msk [vmem:[#allocation2 + $0x40] sm:$0xff] %vm4062_vm9, %v2478_v44  ;;  %vm4070_vm9 = vcmask 523264  }
 0x195   : > { %v1157_v63 = vsel %vm1151_vm1, %v1148_v20, %v974_v42  ;;  %vm4075_vm13 = vmmov %vm4070_vm9 }
 0x198   : > { %v872_v28 = vpop.permute.xlu2 %871 }
 0x199   : > { %v1030_v55 = vpop.permute.xlu1 %1029 }
 0x19a   : > { %v1002_v3 = vpop.permute.xlu0 %1001 }
 0x19b   : > { %v1166_v21 = vsel %vm1160_vm2, %v1157_v63, %v1002_v3 }
 0x19c   : > { %v1175_v52 = vsel %vm1169_vm3, %v1166_v21, %v1030_v55 }
 0x19d   : > { %2372 = vmatmul.msk.f32.gmra.mxu0 %vm4055_vm14, %v1175_v52  ;;  %vm4063_vm14 = vmmov %vm4058_vm5  ;;  %vm4066_vm5 = vcmask 359424   ;;  %v1314_v52 = vld [vmem:[#allocation2] sm:$0xff] }
 0x19e   : > { %1271 = vst.msk [vmem:[#allocation2 + $0x50] sm:$0xff] %vm4063_vm14, %v2478_v44  ;;  %vm4071_vm14 = vcmask 261120  }
 0x1a0   : > { %v953_v19 = vpop.permute.xlu2 %952 }
 0x1a1   : > { %v898_v53 = vpop.permute.xlu1 %897 }
 0x1a2   : > { %v870_v1 = vpop.permute.xlu0 %869 }
 0x1a3   : > { %v1122_v17 = vsel %vm4061_vm4, %v1113_v22, %v870_v1  ;;  %vm4069_vm4 = vmmov %vm4065_vm8  ;;  %vm4073_vm8 = vcmask 326656   ;;  %v1445_v1 = vld [vmem:[%s3975_s2 + $0x18] sm:$0xff]  ;;  %v1444_v22 = vld [vmem:[%s3975_s2 + $0x10] sm:$0xff] }
 0x1a4   : > { %v1131_v35 = vsel %vm4064_vm12, %v1122_v17, %v898_v53  ;;  %1279 = vst.msk [vmem:[#allocation2 + $0x90] sm:$0xff] %vm4069_vm4, %v2478_v44  ;;  %vm4072_vm12 = vcmask 293888   ;;  %vm4074_vm11 = vmmov %vm4069_vm4  ;;  %2422 = vmatpush.msra.mxu2 %v1445_v1  ;;  %2423 = vmatpush.msra.mxu3 %v1445_v1  ;;  %v1443_v17 = vld [vmem:[%s3975_s2 + $0x8] sm:$0xff] }
 0x1a5   : > { %v1140_v57 = vsel %vm4066_vm5, %v1131_v35, %v926_v58  ;;  %vm4076_vm15 = vmmov %vm4069_vm4  ;;  %1482 = vmatpush.msra.mxu1 %v1445_v1 }
 0x1a6   : > { %2424 = vmatpush.msra.mxu2 %v1444_v22  ;;  %2425 = vmatpush.msra.mxu3 %v1444_v22 }
 0x1a7   : > { %1483 = vmatpush.msra.mxu1 %v1444_v22 }
 0x1a8   : > { %v1034_v24 = vpop.permute.xlu2 %1033  ;;  %2426 = vmatpush.msra.mxu2 %v1443_v17  ;;  %2427 = vmatpush.msra.mxu3 %v1443_v17 }
 0x1a9   : > { %v976_v26 = vpop.permute.xlu1 %975  ;;  %1484 = vmatpush.msra.mxu1 %v1443_v17 }
 0x1aa   : > { %v951_v43 = vpop.permute.xlu0 %950 }
 0x1ab   : > { %v1149_v40 = vsel %vm1142_vm0, %v1140_v57, %v951_v43 }
 0x1ac   : > { %v1158_v23 = vsel %vm1151_vm1, %v1149_v40, %v976_v26  ;;  %v1442_v26 = vld [vmem:[%s3975_s2] sm:$0xff] }
 0x1ad   : > { %v1167_v9 = vsel %vm1160_vm2, %v1158_v23, %v1004_v10  ;;  %v1519_v10 = vld [vmem:[#allocation2 + $0x2] sm:$0xff]  ;;  %2428 = vmatpush.msra.mxu2 %v1442_v26  ;;  %2429 = vmatpush.msra.mxu3 %v1442_v26 }
 0x1ae   : > { %1485 = vmatpush.msra.mxu1 %v1442_v26 }
 0x1b1   : > { %v847_v5 = vpop.permute.xlu1 %846 }
 0x1b2   : > { %v1032_v39 = vpop.permute.xlu0 %1031  ;;  %v1114_v49 = vsel %vm4071_vm14, %v3137_v54, %v847_v5 }
 0x1b3   : > { %v1176_v51 = vsel %vm1169_vm3, %v1167_v9, %v1032_v39  ;;  %v1123_v36 = vsel %vm4072_vm12, %v1114_v49, %v872_v28 }
 0x1b4   : > { %2373 = vmatmul.msk.f32.gmra.mxu0 %vm4070_vm9, %v1176_v51 }
 0x1b9   : > { %v928_v7 = vpop.permute.xlu1 %927 }
 0x1ba   : > { %v900_v47 = vpop.permute.xlu0 %899 }
 0x1bb   : > { %v1228_v0 = vpop.f32.mrf.mxu0  ;;  %v1132_v18 = vsel %vm4073_vm8, %v1123_v36, %v900_v47  ;;  %vm4085_vm8 = vcmask 261120  }
 0x1bc   : > { %v1252_v14 = vmax.f32 %v1228_v0, 0.0  ;;  %v1141_v46 = vsel %vm4066_vm5, %v1132_v18, %v928_v7  ;;  %vm4087_vm5 = vmmov %vm4085_vm8 }
 0x1bd   : > { %v1150_v56 = vsel %vm1142_vm0, %v1141_v46, %v953_v19  ;;  %vm4077_vm0 = vmmov %vm4069_vm4 }
 0x1be   : > { %1282 = vst.msk [vmem:[#allocation2 + $0x11] sm:$0xff] %vm4074_vm11, %v1252_v14  ;;  %vm4081_vm4 = vmmov %vm4077_vm0 }
 0x1bf   : > { %vm4082_vm9 = vmmov %vm4077_vm0 }
 0x1c0   : > { %vm4083_vm14 = vmmov %vm4077_vm0 }
 0x1c1   : > { %v1006_v61 = vpop.permute.xlu1 %1005  ;;  %vm4084_vm12 = vmmov %vm4077_vm0 }
 0x1c2   : > { %v978_v37 = vpop.permute.xlu0 %977  ;;  %vm4086_vm11 = vmmov %vm4077_vm0 }
 0x1c3   : > { %v1159_v54 = vsel %vm1151_vm1, %v1150_v56, %v978_v37  ;;  %vm4078_vm1 = vmmov %vm4077_vm0 }
 0x1c4   : > { %v1168_v15 = vsel %vm1160_vm2, %v1159_v54, %v1006_v61  ;;  %vm4079_vm2 = vmmov %vm4077_vm0 }
 0x1c5   : > { %v1298_v2 = vld [vmem:[#allocation2 + $0x10] sm:$0xff]  ;;  %v1177_v62 = vsel %vm1169_vm3, %v1168_v15, %v1034_v24  ;;  %vm4080_vm3 = vmmov %vm4077_vm0 }
 0x1c6   : > { %1330 = vrot.lane.b32.xlu0 %v1298_v2, %s2464_s23  ;;  %2374 = vmatmul.msk.f32.gmra.mxu0 %vm4075_vm13, %v1177_v62  ;;  %v3416_v45 = vld [vmem:[#allocation2 + $0x11] sm:$0xff]  ;;  %vm4088_vm13 = vmmov %vm4077_vm0 }
 0x1c7   : > { %v3456_v44 = vld [vmem:[#allocation2 + $0x12] sm:$0xff] }
 0x1d1   : > { %v1231_v8 = vpop.f32.mrf.mxu0 }
 0x1d2   : > { %v1253_v34 = vmax.f32 %v1231_v8, 0.0 }
 0x1d4   : > { %1283 = vst.msk [vmem:[#allocation2 + $0x21] sm:$0xff] %vm4076_vm15, %v1253_v34  ;;  %vm4089_vm15 = vmmov %vm4087_vm5 }
 0x1db   : > { %v3378_v16 = vld [vmem:[#allocation2 + $0x20] sm:$0xff] }
 0x1dc   : > { %1332 = vrot.lane.b32.xlu1 %v3378_v16, %s2464_s23  ;;  %v3437_v58 = vld [vmem:[#allocation2 + $0x21] sm:$0xff] }
 0x1dd   : > { %v3490_v57 = vld [vmem:[#allocation2 + $0x22] sm:$0xff] }
 0x1e2   : > { %v1234_v32 = vpop.f32.mrf.mxu0 }
 0x1e3   : > { %v1254_v12 = vmax.f32 %v1234_v32, 0.0 }
 0x1e5   : > { %1284 = vst.msk [vmem:[#allocation2 + $0x31] sm:$0xff] %vm4077_vm0, %v1254_v12  ;;  %vm4090_vm0 = vmmov %vm4087_vm5 }
 0x1ec   : > { %v3383_v4 = vld [vmem:[#allocation2 + $0x30] sm:$0xff] }
 0x1ed   : > { %1334 = vrot.lane.b32.xlu2 %v3383_v4, %s2464_s23  ;;  %v3404_v31 = vld [vmem:[#allocation2 + $0x31] sm:$0xff] }
 0x1ee   : > { %v3515_v51 = vld [vmem:[#allocation2 + $0x32] sm:$0xff] }
 0x1f3   : > { %v1237_v33 = vpop.f32.mrf.mxu0 }
 0x1f4   : > { %v1255_v11 = vmax.f32 %v1237_v33, 0.0 }
 0x1f6   : > { %1285 = vst.msk [vmem:[#allocation2 + $0x41] sm:$0xff] %vm4078_vm1, %v1255_v11 }
 0x1fd   : > { %v3388_v13 = vld [vmem:[#allocation2 + $0x40] sm:$0xff] }
 0x1fe   : > { %1336 = vrot.lane.b32.xlu0 %v3388_v13, %s2464_s23  ;;  %v3423_v55 = vld [vmem:[#allocation2 + $0x41] sm:$0xff] }
 0x1ff   : > { %v3547_v37 = vld [vmem:[#allocation2 + $0x42] sm:$0xff] }
 0x209   : > { %v1240_v41 = vpop.f32.mrf.mxu0 }
 0x20a   : > { %v1256_v25 = vmax.f32 %v1240_v41, 0.0 }
 0x20c   : > { %1286 = vst.msk [vmem:[#allocation2 + $0x51] sm:$0xff] %vm4079_vm2, %v1256_v25  ;;  %v2385_v25 = vld [vmem:[%s3975_s2 + $0x30] sm:$0xff]  ;;  %vm4091_vm2 = vmmov %vm4078_vm1 }
 0x213   : > { %v3393_v42 = vld [vmem:[#allocation2 + $0x50] sm:$0xff] }
 0x214   : > { %1338 = vrot.lane.b32.xlu1 %v3393_v42, %s2464_s23  ;;  %v3446_v21 = vld [vmem:[#allocation2 + $0x51] sm:$0xff] }
 0x215   : > { %v3583_v41 = vld [vmem:[#allocation2 + $0x52] sm:$0xff] }
 0x21a   : > { %v1243_v30 = vpop.f32.mrf.mxu0 }
 0x21b   : > { %v1257_v48 = vmax.f32 %v1243_v30, 0.0 }
 0x21d   : > { %1287 = vst.msk [vmem:[#allocation2 + $0x61] sm:$0xff] %vm4080_vm3, %v1257_v48  ;;  %v2384_v48 = vld [vmem:[%s3975_s2 + $0x28] sm:$0xff]  ;;  %vm4092_vm3 = vmmov %vm4090_vm0 }
 0x224   : > { %v3398_v60 = vld [vmem:[#allocation2 + $0x60] sm:$0xff] }
 0x225   : > { %1340 = vrot.lane.b32.xlu2 %v3398_v60, %s2464_s23  ;;  %v3412_v6 = vld [vmem:[#allocation2 + $0x61] sm:$0xff] }
 0x22d   : > { %1362 = vrot.lane.b32.xlu2 %v1306_v27, %s2466_s25 }
 0x231   : > { %v1246_v29 = vpop.f32.mrf.mxu0 }
 0x232   : > { %v1258_v50 = vmax.f32 %v1246_v29, 0.0  ;;  %v2383_v29 = vld [vmem:[%s3975_s2 + $0x20] sm:$0xff] }
 0x234   : > { %1288 = vst.msk [vmem:[#allocation2 + $0x71] sm:$0xff] %vm4081_vm4, %v1258_v50  ;;  %v2398_v50 = vld [vmem:[%s3975_s2 + $0x58] sm:$0xff]  ;;  %vm4093_vm4 = vmmov %vm4090_vm0 }
 0x235   : > { %1368 = vrot.lane.b32.xlu2 %v3404_v31, %s2466_s25  ;;  %1871 = vmatpush.msrb.mxu3 %v2398_v50 }
 0x238   : > { %v1331_v43 = vpop.permute.xlu0 %1330 }
 0x239   : > { %v1418_v40 = vsel %vm4083_vm14, %v3416_v45, %v1331_v43  ;;  %vm4095_vm14 = vmmov %vm4078_vm1 }
 0x23b   : > { %v3408_v59 = vld [vmem:[#allocation2 + $0x70] sm:$0xff] }
 0x23c   : > { %1342 = vrot.lane.b32.xlu0 %v3408_v59, %s2464_s23  ;;  %v3433_v63 = vld [vmem:[#allocation2 + $0x71] sm:$0xff] }
 0x23d   : > { %1374 = vrot.lane.b32.xlu2 %v3412_v6, %s2466_s25 }
 0x243   : > { %v1249_v38 = vpop.f32.mrf.mxu0 }
 0x244   : > { %v1259_v20 = vmax.f32 %v1249_v38, 0.0  ;;  %1364 = vrot.lane.b32.xlu0 %v3416_v45, %s2466_s25 }
 0x245   : > { %1400 = vrot.lane.b32.xlu2 %v3383_v4, %s2468_s27 }
 0x246   : > { %1289 = vst.msk [vmem:[#allocation2 + $0x81] sm:$0xff] %vm4082_vm9, %v1259_v20  ;;  %vm4094_vm9 = vmmov %vm4078_vm1 }
 0x247   : > { %v3467_v53 = vpop.permute.xlu2 %1334 }
 0x24c   : > { %1370 = vrot.lane.b32.xlu0 %v3423_v55, %s2466_s25 }
 0x24d   : > { %1406 = vrot.lane.b32.xlu2 %v3398_v60, %s2468_s27  ;;  %v3429_v3 = vld [vmem:[#allocation2 + $0x80] sm:$0xff] }
 0x24e   : > { %1344 = vrot.lane.b32.xlu1 %v3429_v3, %s2464_s23  ;;  %v3540_v46 = vpop.permute.xlu1 %1332  ;;  %v3565_v34 = vld [vmem:[#allocation2 + $0x81] sm:$0xff] }
 0x24f   : > { %v1419_v26 = vsel %vm4078_vm1, %v3437_v58, %v3540_v46 }
 0x254   : > { %1376 = vrot.lane.b32.xlu0 %v3433_v63, %s2466_s25 }
 0x255   : > { %1408 = vrot.lane.b32.xlu2 %v3408_v59, %s2468_s27 }
 0x256   : > { %1366 = vrot.lane.b32.xlu1 %v3437_v58, %s2466_s25 }
 0x25c   : > { %1396 = vrot.lane.b32.xlu0 %v1298_v2, %s2468_s27 }
 0x25d   : > { %1734 = vrot.lane.b32.xlu2 %v3378_v16, %s2464_s23 }
 0x25e   : > { %1372 = vrot.lane.b32.xlu1 %v3446_v21, %s2466_s25 }
 0x264   : > { %1398 = vrot.lane.b32.xlu0 %v3378_v16, %s2468_s27 }
 0x265   : > { %1782 = vrot.lane.b32.xlu2 %v1298_v2, %s2468_s27 }
 0x266   : > { %1394 = vrot.lane.b32.xlu1 %v1314_v52, %s2468_s27  ;;  %v2396_v52 = vld [vmem:[%s3975_s2 + $0x48] sm:$0xff] }
 0x26c   : > { %1535 = vrot.lane.b32.xlu0 %v3416_v45, %s2464_s23 }
 0x26d   : > { %1569 = vrot.lane.b32.xlu2 %v3456_v44, %s2466_s25 }
 0x26e   : > { %1402 = vrot.lane.b32.xlu1 %v3388_v13, %s2468_s27 }
 0x270   : > { %v1337_v39 = vpop.permute.xlu0 %1336 }
 0x271   : > { %v1421_v49 = vsel %vm4084_vm12, %v3423_v55, %v1337_v39  ;;  %v3644_v39 = vld [vmem:[#allocation2 + $0x62] sm:$0xff]  ;;  %vm4096_vm12 = vmmov %vm4090_vm0 }
 0x274   : > { %1591 = vrot.lane.b32.xlu0 %v1306_v27, %s2468_s27 }
 0x275   : > { %1593 = vrot.lane.b32.xlu2 %v3416_v45, %s2468_s27 }
 0x276   : > { %1404 = vrot.lane.b32.xlu1 %v3393_v42, %s2468_s27 }
 0x27c   : > { %1537 = vrot.lane.b32.xlu0 %v3437_v58, %s2464_s23 }
 0x27d   : > { %1784 = vrot.lane.b32.xlu2 %v3378_v16, %s2468_s27 }
 0x27e   : > { %1567 = vrot.lane.b32.xlu1 %v1519_v10, %s2466_s25  ;;  %v2395_v10 = vld [vmem:[%s3975_s2 + $0x40] sm:$0xff] }
 0x27f   : > { %v3483_v35 = vpop.permute.xlu2 %1340 }
 0x284   : > { %1736 = vrot.lane.b32.xlu0 %v3383_v4, %s2464_s23 }
 0x285   : > { %1571 = vrot.lane.b32.xlu2 %v3490_v57, %s2466_s25 }
 0x286   : > { %1758 = vrot.lane.b32.xlu1 %v3416_v45, %s2466_s25  ;;  %v1339_v15 = vpop.permute.xlu1 %1338 }
 0x287   : > { %v1363_v28 = vpop.permute.xlu2 %1362  ;;  %v1422_v43 = vsel %vm4091_vm2, %v3446_v21, %v1339_v15 }
 0x288   : > { %v3499_v23 = vsel %vm1070_vm7, %v1418_v40, %v1363_v28 }
 0x28c   : > { %1760 = vrot.lane.b32.xlu0 %v3437_v58, %s2466_s25 }
 0x28d   : > { %1595 = vrot.lane.b32.xlu2 %v3437_v58, %s2468_s27 }
 0x28e   : > { %1916 = vrot.lane.b32.xlu1 %v3437_v58, %s2464_s23 }
 0x28f   : > { %v1369_v5 = vpop.permute.xlu2 %1368 }
 0x290   : > { %v1429_v19 = vsel %vm1070_vm7, %v1421_v49, %v1369_v5 }
 0x294   : > { %1539 = vrot.lane.b32.xlu0 %v3404_v31, %s2464_s23 }
 0x295   : > { %1786 = vrot.lane.b32.xlu2 %v3383_v4, %s2468_s27 }
 0x296   : > { %1948 = vrot.lane.b32.xlu1 %v3456_v44, %s2466_s25 }
 0x297   : > { %v1375_v9 = vpop.permute.xlu2 %1374 }
 0x29c   : > { %1738 = vrot.lane.b32.xlu0 %v3388_v13, %s2464_s23 }
 0x29d   : > { %1573 = vrot.lane.b32.xlu2 %v3515_v51, %s2466_s25 }
 0x29e   : > { %1972 = vrot.lane.b32.xlu1 %v3416_v45, %s2468_s27  ;;  %v2397_v45 = vld [vmem:[%s3975_s2 + $0x50] sm:$0xff] }
 0x29f   : > { %v1401_v7 = vpop.permute.xlu2 %1400  ;;  %1872 = vmatpush.msrb.mxu3 %v2397_v45 }
 0x2a0   : > { %v1437_v47 = vsel %vm1088_vm10, %v1429_v19, %v1401_v7  ;;  %v1420_v19 = vsel %vm4094_vm9, %v3404_v31, %v3467_v53  ;;  %v1423_v7 = vsel %vm4095_vm14, %v3412_v6, %v3483_v35  ;;  %v2410_v53 = vld [vmem:[%s3975_s2 + $0x78] sm:$0xff]  ;;  %v2409_v35 = vld [vmem:[%s3975_s2 + $0x70] sm:$0xff]  ;;  %vm4105_vm9 = vmmov %vm4090_vm0 }
 0x2a1   : > { %2378 = vmatmul.msk.f32.vlgmr.msra.gmra.mxu2 %vm4085_vm8, %v1437_v47  ;;  %1873 = vmatpush.msrb.mxu3 %v2396_v52  ;;  %vm4097_vm8 = vmmov %vm4090_vm0 }
 0x2a2   : > { %2061 = vmatpush.msrb.mxu1 %v2410_v53  ;;  %vm4106_vm14 = vmmov %vm4091_vm2 }
 0x2a3   : > { %1874 = vmatpush.msrb.mxu3 %v2395_v10 }
 0x2a4   : > { %1762 = vrot.lane.b32.xlu0 %v3404_v31, %s2466_s25  ;;  %2062 = vmatpush.msrb.mxu1 %v2409_v35 }
 0x2a5   : > { %1597 = vrot.lane.b32.xlu2 %v3404_v31, %s2468_s27 }
 0x2a6   : > { %1918 = vrot.lane.b32.xlu1 %v3404_v31, %s2464_s23 }
 0x2a7   : > { %v1407_v36 = vpop.permute.xlu2 %1406 }
 0x2ac   : > { %1541 = vrot.lane.b32.xlu0 %v3423_v55, %s2464_s23 }
 0x2ad   : > { %1788 = vrot.lane.b32.xlu2 %v3388_v13, %s2468_s27  ;;  %v2386_v13 = vld [vmem:[%s3975_s2 + $0x38] sm:$0xff] }
 0x2ae   : > { %v1343_v0 = vpop.permute.xlu0 %1342  ;;  %1950 = vrot.lane.b32.xlu1 %v3490_v57, %s2466_s25  ;;  %1680 = vmatpush.msrb.mxu2 %v2386_v13 }
 0x2af   : > { %v1424_v18 = vsel %vm4086_vm11, %v3433_v63, %v1343_v0  ;;  %v1409_v14 = vpop.permute.xlu2 %1408  ;;  %vm4098_vm11 = vmmov %vm4078_vm1 }
 0x2b0   : > { %v1432_v61 = vsel %vm1070_vm7, %v1424_v18, %v1375_v9  ;;  %1681 = vmatpush.msrb.mxu2 %v2385_v25 }
 0x2b1   : > { %v1440_v56 = vsel %vm1088_vm10, %v1432_v61, %v1407_v36 }
 0x2b2   : > { %2381 = vmatmul.msk.f32.vlgmr.msra.gmra.mxu3 %vm4087_vm5, %v1440_v56  ;;  %1682 = vmatpush.msrb.mxu2 %v2384_v48  ;;  %v2408_v56 = vld [vmem:[%s3975_s2 + $0x68] sm:$0xff]  ;;  %vm4099_vm5 = vmmov %vm4090_vm0 }
 0x2b3   : > { %2063 = vmatpush.msrb.mxu1 %v2408_v56 }
 0x2b4   : > { %1740 = vrot.lane.b32.xlu0 %v3393_v42, %s2464_s23  ;;  %1683 = vmatpush.msrb.mxu2 %v2383_v29 }
 0x2b5   : > { %1575 = vrot.lane.b32.xlu2 %v3547_v37, %s2466_s25 }
 0x2b6   : > { %v1365_v24 = vpop.permute.xlu0 %1364  ;;  %1974 = vrot.lane.b32.xlu1 %v3437_v58, %s2468_s27 }
 0x2b7   : > { %v3553_v54 = vpop.permute.xlu2 %1734  ;;  %v1427_v28 = vsel %vm1070_vm7, %v1419_v26, %v1365_v24 }
 0x2bc   : > { %1764 = vrot.lane.b32.xlu0 %v3423_v55, %s2466_s25 }
 0x2bd   : > { %1599 = vrot.lane.b32.xlu2 %v3423_v55, %s2468_s27 }
 0x2be   : > { %v1371_v2 = vpop.permute.xlu0 %1370  ;;  %1920 = vrot.lane.b32.xlu1 %v3423_v55, %s2464_s23 }
 0x2bf   : > { %v3561_v62 = vpop.permute.xlu2 %1782 }
 0x2c0   : > { %v1345_v8 = vpop.permute.xlu1 %1344 }
 0x2c1   : > { %v1425_v16 = vsel %vm4088_vm13, %v3565_v34, %v1345_v8  ;;  %vm4100_vm13 = vmmov %vm4078_vm1 }
 0x2c4   : > { %1543 = vrot.lane.b32.xlu0 %v3446_v21, %s2464_s23 }
 0x2c5   : > { %1790 = vrot.lane.b32.xlu2 %v3393_v42, %s2468_s27 }
 0x2c6   : > { %v1377_v32 = vpop.permute.xlu0 %1376  ;;  %1952 = vrot.lane.b32.xlu1 %v3515_v51, %s2466_s25 }
 0x2c7   : > { %v1433_v12 = vsel %vm1070_vm7, %v1425_v16, %v1377_v32  ;;  %v3574_v4 = vpop.permute.xlu2 %1569 }
 0x2c8   : > { %v1367_v33 = vpop.permute.xlu1 %1366  ;;  %v1441_v11 = vsel %vm1088_vm10, %v1433_v12, %v1409_v14 }
 0x2c9   : > { %2382 = vmatmul.msk.f32.gmra.mxu3 %vm4089_vm15, %v1441_v11  ;;  %v1428_v47 = vsel %vm1070_vm7, %v1420_v19, %v1367_v33  ;;  %vm4101_vm15 = vmmov %vm4078_vm1 }
 0x2ca   : > { %v1806_v11 = vsel %vm4101_vm15, %v3437_v58, %v3553_v54  ;;  %vm4102_vm1 = vmmov %vm4090_vm0 }
 0x2cb   : > { %vm4112_vm15 = vmmov %vm4091_vm2 }
 0x2cc   : > { %1742 = vrot.lane.b32.xlu0 %v3398_v60, %s2464_s23 }
 0x2cd   : > { %1577 = vrot.lane.b32.xlu2 %v3583_v41, %s2466_s25 }
 0x2ce   : > { %v1397_v42 = vpop.permute.xlu0 %1396  ;;  %1976 = vrot.lane.b32.xlu1 %v3404_v31, %s2468_s27 }
 0x2cf   : > { %v3592_v30 = vpop.permute.xlu2 %1593 }
 0x2d0   : > { %v1373_v27 = vpop.permute.xlu1 %1372 }
 0x2d1   : > { %v1431_v36 = vsel %vm1070_vm7, %v1423_v7, %v1373_v27  ;;  %v3760_v7 = vld [vmem:[#allocation2 + $0x91] sm:$0xff] }
 0x2d4   : > { %1766 = vrot.lane.b32.xlu0 %v3446_v21, %s2466_s25 }
 0x2d5   : > { %1601 = vrot.lane.b32.xlu2 %v3446_v21, %s2468_s27 }
 0x2d6   : > { %v1399_v38 = vpop.permute.xlu0 %1398  ;;  %1922 = vrot.lane.b32.xlu1 %v3446_v21, %s2464_s23 }
 0x2d7   : > { %v3612_v20 = vpop.permute.xlu2 %1784  ;;  %v1436_v14 = vsel %vm1088_vm10, %v1428_v47, %v1399_v38 }
 0x2d8   : > { %v1395_v1 = vpop.permute.xlu1 %1394 }
 0x2d9   : > { %v1434_v22 = vsel %vm1088_vm10, %v3499_v23, %v1395_v1  ;;  %v1430_v23 = vsel %vm1070_vm7, %v1422_v43, %v1371_v2  ;;  %v2407_v2 = vld [vmem:[%s3975_s2 + $0x60] sm:$0xff]  ;;  %v1725_v43 = vld [vmem:[#allocation2 + $0x90] sm:$0xff] }
 0x2da   : > { %2375 = vmatmul.msk.f32.vlgmr.msra.gmra.mxu1 %vm4090_vm0, %v1434_v22 }
 0x2db   : > { %2064 = vmatpush.msrb.mxu1 %v2407_v2 }
 0x2dc   : > { %1545 = vrot.lane.b32.xlu0 %v3412_v6, %s2464_s23 }
 0x2dd   : > { %1792 = vrot.lane.b32.xlu2 %v3398_v60, %s2468_s27  ;;  %v1435_v60 = vsel %vm1088_vm10, %v1427_v28, %v1397_v42 }
 0x2de   : > { %v1536_v17 = vpop.permute.xlu0 %1535  ;;  %1954 = vrot.lane.b32.xlu1 %v3547_v37, %s2466_s25 }
 0x2df   : > { %v3634_v40 = vpop.permute.xlu2 %1571  ;;  %v1615_v24 = vsel %vm4098_vm11, %v3456_v44, %v1536_v17  ;;  %vm4109_vm11 = vmmov %vm4090_vm0 }
 0x2e0   : > { %v1403_v5 = vpop.permute.xlu1 %1402 }
 0x2e1   : > { %v1438_v9 = vsel %vm1088_vm10, %v1430_v23, %v1403_v5 }
 0x2e2   : > { %2376 = vmatmul.msk.f32.gmra.mxu1 %vm4092_vm3, %v1435_v60  ;;  %2379 = vmatmul.msk.f32.gmra.mxu2 %vm4093_vm4, %v1438_v9  ;;  %vm4103_vm3 = vmmov %vm4090_vm0 }
 0x2e3   : > { %vm4104_vm4 = vmmov %vm4091_vm2 }
 0x2e4   : > { %1744 = vrot.lane.b32.xlu0 %v3408_v59, %s2464_s23 }
 0x2e5   : > { %1579 = vrot.lane.b32.xlu2 %v3644_v39, %s2466_s25 }
 0x2e6   : > { %v1592_v49 = vpop.permute.xlu0 %1591  ;;  %1978 = vrot.lane.b32.xlu1 %v3423_v55, %s2468_s27 }
 0x2e7   : > { %v1596_v18 = vpop.permute.xlu2 %1595 }
 0x2e8   : > { %v1405_v0 = vpop.permute.xlu1 %1404 }
 0x2e9   : > { %v1439_v46 = vsel %vm1088_vm10, %v1431_v36, %v1405_v0 }
 0x2ea   : > { %2377 = vmatmul.msk.f32.gmra.mxu1 %vm4096_vm12, %v1436_v14  ;;  %2380 = vmatmul.msk.f32.gmra.mxu2 %vm4097_vm8, %v1439_v46  ;;  %vm4107_vm12 = vmmov %vm4090_vm0 }
 0x2eb   : > { %vm4108_vm8 = vmmov %vm4091_vm2 }
 0x2ec   : > { %1768 = vrot.lane.b32.xlu0 %v3412_v6, %s2466_s25 }
 0x2ed   : > { %1603 = vrot.lane.b32.xlu2 %v3412_v6, %s2468_s27 }
 0x2ee   : > { %v1538_v61 = vpop.permute.xlu0 %1537  ;;  %1924 = vrot.lane.b32.xlu1 %v3412_v6, %s2464_s23 }
 0x2ef   : > { %v1787_v32 = vpop.permute.xlu2 %1786  ;;  %v1616_v12 = vsel %vm4100_vm13, %v3490_v57, %v1538_v61  ;;  %vm4111_vm13 = vmmov %vm4090_vm0 }
 0x2f0   : > { %v1568_v15 = vpop.permute.xlu1 %1567  ;;  %v1624_v33 = vsel %vm1070_vm7, %v1616_v12, %v3574_v4  ;;  %v3707_v4 = vld [vmem:[#allocation2 + $0x72] sm:$0xff] }
 0x2f1   : > { %v1623_v8 = vsel %vm1070_vm7, %v1615_v24, %v1568_v15  ;;  %v1632_v42 = vsel %vm1088_vm10, %v1624_v33, %v3592_v30  ;;  %v3779_v15 = vld [vmem:[#allocation2 + $0x82] sm:$0xff] }
 0x2f2   : > { %v1631_v16 = vsel %vm1088_vm10, %v1623_v8, %v1592_v49 }
 0x2f3   : > { %2387 = vmatmul.msk.f32.vlgmr.msrb.gmra.mxu2 %vm4099_vm5, %v1631_v16  ;;  %vm4110_vm5 = vmmov %vm4091_vm2 }
 0x2f4   : > { %1547 = vrot.lane.b32.xlu0 %v3433_v63, %s2464_s23 }
 0x2f5   : > { %1794 = vrot.lane.b32.xlu2 %v3408_v59, %s2468_s27 }
 0x2f6   : > { %v1737_v44 = vpop.permute.xlu0 %1736  ;;  %1956 = vrot.lane.b32.xlu1 %v3583_v41, %s2466_s25 }
 0x2f7   : > { %v1574_v48 = vpop.permute.xlu2 %1573  ;;  %v1807_v58 = vsel %vm4091_vm2, %v3404_v31, %v1737_v44 }
 0x2f8   : > { %v1759_v13 = vpop.permute.xlu1 %1758 }
 0x2f9   : > { %v1814_v25 = vsel %vm1070_vm7, %v1806_v11, %v1759_v13 }
 0x2fa   : > { %v1822_v59 = vsel %vm1088_vm10, %v1814_v25, %v3561_v62 }
 0x2fb   : > { %2388 = vmatmul.msk.f32.gmra.mxu2 %vm4090_vm0, %v1632_v42  ;;  %2399 = vmatmul.msk.f32.vlgmr.msrb.gmra.mxu3 %vm4102_vm1, %v1822_v59  ;;  %vm4113_vm1 = vmmov %vm4091_vm2 }
 0x2fc   : > { %1746 = vrot.lane.b32.xlu0 %v3429_v3, %s2464_s23  ;;  %vm4114_vm2 = vmmov %vm4090_vm0 }
 0x2fd   : > { %1581 = vrot.lane.b32.xlu2 %v3707_v4, %s2466_s25 }
 0x2fe   : > { %v1761_v54 = vpop.permute.xlu0 %1760  ;;  %1980 = vrot.lane.b32.xlu1 %v3446_v21, %s2468_s27 }
 0x2ff   : > { %v1815_v62 = vsel %vm1070_vm7, %v1807_v58, %v1761_v54  ;;  %v1598_v31 = vpop.permute.xlu2 %1597 }
 0x300   : > { %v1917_v30 = vpop.permute.xlu1 %1916  ;;  %v1823_v27 = vsel %vm1088_vm10, %v1815_v62, %v3612_v20 }
 0x301   : > { %v1996_v1 = vsel %vm4106_vm14, %v3490_v57, %v1917_v30  ;;  %vm4118_vm14 = vmmov %vm4090_vm0 }
 0x303   : > { %2400 = vmatmul.msk.f32.gmra.mxu3 %vm4103_vm3, %v1823_v27  ;;  %vm4115_vm3 = vmmov %vm4113_vm1 }
 0x304   : > { %1770 = vrot.lane.b32.xlu0 %v3433_v63, %s2466_s25 }
 0x305   : > { %1605 = vrot.lane.b32.xlu2 %v3433_v63, %s2468_s27 }
 0x306   : > { %v1540_v29 = vpop.permute.xlu0 %1539  ;;  %1926 = vrot.lane.b32.xlu1 %v3433_v63, %s2464_s23 }
 0x307   : > { %v1617_v50 = vsel %vm4104_vm4, %v3515_v51, %v1540_v29  ;;  %v1789_v17 = vpop.permute.xlu2 %1788  ;;  %vm4116_vm4 = vmmov %vm4090_vm0 }
 0x308   : > { %v1949_v45 = vpop.permute.xlu1 %1948  ;;  %v1625_v38 = vsel %vm1070_vm7, %v1617_v50, %v3634_v40 }
 0x309   : > { %v1633_v20 = vsel %vm1088_vm10, %v1625_v38, %v1596_v18  ;;  %v2004_v22 = vsel %vm1070_vm7, %v1996_v1, %v1949_v45 }
 0x30a   : > { %2389 = vmatmul.msk.f32.gmra.mxu2 %vm4105_vm9, %v1633_v20  ;;  %vm4117_vm9 = vmmov %vm4113_vm1 }
 0x30c   : > { %1549 = vrot.lane.b32.xlu0 %v3565_v34, %s2464_s23 }
 0x30d   : > { %1796 = vrot.lane.b32.xlu2 %v3429_v3, %s2468_s27 }
 0x30e   : > { %v1739_v52 = vpop.permute.xlu0 %1738  ;;  %1958 = vrot.lane.b32.xlu1 %v3644_v39, %s2466_s25 }
 0x30f   : > { %v1808_v3 = vsel %vm4108_vm8, %v3423_v55, %v1739_v52  ;;  %v1576_v5 = vpop.permute.xlu2 %1575  ;;  %vm4120_vm8 = vmmov %vm4090_vm0 }
 0x310   : > { %v1973_v10 = vpop.permute.xlu1 %1972 }
 0x311   : > { %v2012_v26 = vsel %vm1088_vm10, %v2004_v22, %v1973_v10 }
 0x312   : > { %2411 = vmatmul.msk.f32.vlgmr.msrb.gmra.mxu1 %vm4107_vm12, %v2012_v26  ;;  %vm4119_vm12 = vmmov %vm4113_vm1 }
 0x314   : > { %1748 = vrot.lane.b32.xlu0 %v1725_v43, %s2464_s23 }
 0x315   : > { %1986 = vrot.lane.b32.xlu2 %v3565_v34, %s2468_s27 }
 0x316   : > { %v1763_v40 = vpop.permute.xlu0 %1762  ;;  %1982 = vrot.lane.b32.xlu1 %v3412_v6, %s2468_s27 }
 0x317   : > { %v1816_v57 = vsel %vm1070_vm7, %v1808_v3, %v1763_v40  ;;  %v1600_v47 = vpop.permute.xlu2 %1599 }
 0x318   : > { %v1919_v28 = vpop.permute.xlu1 %1918  ;;  %v1824_v23 = vsel %vm1088_vm10, %v1816_v57, %v1787_v32 }
 0x319   : > { %2401 = vmatmul.msk.f32.gmra.mxu3 %vm4109_vm11, %v1824_v23  ;;  %v1997_v0 = vsel %vm4112_vm15, %v3515_v51, %v1919_v28  ;;  %vm4121_vm11 = vmmov %vm4113_vm1 }
 0x31a   : > { %vm4124_vm15 = vmmov %vm4090_vm0 }
 0x31c   : > { %1772 = vrot.lane.b32.xlu0 %v3565_v34, %s2466_s25 }
 0x31e   : > { %v1542_v60 = vpop.permute.xlu0 %1541  ;;  %1928 = vrot.lane.b32.xlu1 %v3565_v34, %s2464_s23 }
 0x31f   : > { %v1618_v55 = vsel %vm4110_vm5, %v3547_v37, %v1542_v60  ;;  %v1791_v61 = vpop.permute.xlu2 %1790  ;;  %vm4122_vm5 = vmmov %vm4090_vm0 }
 0x320   : > { %v1951_v9 = vpop.permute.xlu1 %1950  ;;  %v1626_v49 = vsel %vm1070_vm7, %v1618_v55, %v1574_v48 }
 0x321   : > { %v1634_v19 = vsel %vm1088_vm10, %v1626_v49, %v1598_v31  ;;  %v2005_v18 = vsel %vm1070_vm7, %v1997_v0, %v1951_v9 }
 0x322   : > { %2390 = vmatmul.msk.f32.gmra.mxu2 %vm4111_vm13, %v1634_v19  ;;  %vm4123_vm13 = vmmov %vm4113_vm1 }
 0x324   : > { %1930 = vrot.lane.b32.xlu0 %v3760_v7, %s2464_s23  ;;  %v3808_v22 = vpop.f32.mrf.mxu2 }
 0x326   : > { %v1741_v36 = vpop.permute.xlu0 %1740  ;;  %1960 = vrot.lane.b32.xlu1 %v3707_v4, %s2466_s25 }
 0x327   : > { %v1809_v53 = vsel %vm4113_vm1, %v3446_v21, %v1741_v36  ;;  %v1578_v32 = vpop.permute.xlu2 %1577 }
 0x328   : > { %v1975_v14 = vpop.permute.xlu1 %1974 }
 0x329   : > { %v2013_v46 = vsel %vm1088_vm10, %v2005_v18, %v1975_v14 }
 0x32a   : > { %2412 = vmatmul.msk.f32.gmra.mxu1 %vm4090_vm0, %v2013_v46  ;;  %vm4125_vm0 = vmmov %vm4113_vm1 }
 0x32b   : > { %vm4126_vm1 = vmmov %vm4114_vm2 }
 0x32e   : > { %v1765_v35 = vpop.permute.xlu0 %1764  ;;  %1984 = vrot.lane.b32.xlu1 %v3433_v63, %s2468_s27 }
 0x32f   : > { %v1817_v56 = vsel %vm1070_vm7, %v1809_v53, %v1765_v35  ;;  %v1602_v42 = vpop.permute.xlu2 %1601 }
 0x330   : > { %v1921_v24 = vpop.permute.xlu1 %1920  ;;  %v1825_v51 = vsel %vm1088_vm10, %v1817_v56, %v1789_v17 }
 0x331   : > { %2402 = vmatmul.msk.f32.gmra.mxu3 %vm4114_vm2, %v1825_v51  ;;  %v1998_v33 = vsel %vm4117_vm9, %v3547_v37, %v1921_v24  ;;  %vm4127_vm2 = vmmov %vm4125_vm0 }
 0x332   : > { %vm4130_vm9 = vmmov %vm4126_vm1 }
 0x335   : > { %v3837_v56 = vpop.f32.mrf.mxu3 }
 0x336   : > { %v1544_v2 = vpop.permute.xlu0 %1543  ;;  %1962 = vrot.lane.b32.xlu1 %v3779_v15, %s2466_s25  ;;  %s2421_s25 = sshll.u32 %s4162_s16, 6 }
 0x337   : > { %v1619_v21 = vsel %vm4115_vm3, %v3583_v41, %v1544_v2  ;;  %v1793_v37 = vpop.permute.xlu2 %1792  ;;  %vm4128_vm3 = vmmov %vm4126_vm1  ;;  %s3896_s12 = scalar_lea.vmem %s3976_s3, %s2421_s25 }
 0x338   : > { %v1953_v8 = vpop.permute.xlu1 %1952  ;;  %v1627_v16 = vsel %vm1070_vm7, %v1619_v21, %v1576_v5 }
 0x339   : > { %v1635_v12 = vsel %vm1088_vm10, %v1627_v16, %v1600_v47  ;;  %v2006_v11 = vsel %vm1070_vm7, %v1998_v33, %v1953_v8 }
 0x33a   : > { %2391 = vmatmul.msk.f32.gmra.mxu2 %vm4116_vm4, %v1635_v12  ;;  %vm4129_vm4 = vmmov %vm4125_vm0 }
 0x33e   : > { %v1743_v44 = vpop.permute.xlu0 %1742 }
 0x33f   : > { %v1810_v59 = vsel %vm4119_vm12, %v3412_v6, %v1743_v44  ;;  %v1580_v45 = vpop.permute.xlu2 %1579  ;;  %vm4132_vm12 = vmmov %vm4126_vm1 }
 0x340   : > { %v1977_v13 = vpop.permute.xlu1 %1976 }
 0x341   : > { %v2014_v25 = vsel %vm1088_vm10, %v2006_v11, %v1977_v13 }
 0x342   : > { %2413 = vmatmul.msk.f32.gmra.mxu1 %vm4118_vm14, %v2014_v25  ;;  %vm4131_vm14 = vmmov %vm4125_vm0 }
 0x346   : > { %v1767_v48 = vpop.permute.xlu0 %1766 }
 0x347   : > { %v1818_v58 = vsel %vm1070_vm7, %v1810_v59, %v1767_v48  ;;  %v1604_v40 = vpop.permute.xlu2 %1603 }
 0x348   : > { %v1923_v54 = vpop.permute.xlu1 %1922  ;;  %v1826_v62 = vsel %vm1088_vm10, %v1818_v58, %v1791_v61 }
 0x349   : > { %2403 = vmatmul.msk.f32.gmra.mxu3 %vm4120_vm8, %v1826_v62  ;;  %v1999_v38 = vsel %vm4123_vm13, %v3583_v41, %v1923_v54  ;;  %vm4133_vm8 = vmmov %vm4125_vm0 }
 0x34a   : > { %vm4136_vm13 = vmmov %vm4126_vm1 }
 0x34c   : > { %v3846_v12 = vpop.f32.mrf.mxu3 }
 0x34e   : > { %v1546_v30 = vpop.permute.xlu0 %1545 }
 0x34f   : > { %v1620_v27 = vsel %vm4121_vm11, %v3644_v39, %v1546_v30  ;;  %v1795_v60 = vpop.permute.xlu2 %1794  ;;  %vm4134_vm11 = vmmov %vm4126_vm1 }
 0x350   : > { %v1955_v29 = vpop.permute.xlu1 %1954  ;;  %v1628_v31 = vsel %vm1070_vm7, %v1620_v27, %v1578_v32 }
 0x351   : > { %v1636_v50 = vsel %vm1088_vm10, %v1628_v31, %v1602_v42  ;;  %v2007_v20 = vsel %vm1070_vm7, %v1999_v38, %v1955_v29 }
 0x352   : > { %2392 = vmatmul.msk.f32.gmra.mxu2 %vm4122_vm5, %v1636_v50  ;;  %vm4135_vm5 = vmmov %vm4125_vm0 }
 0x356   : > { %v1745_v6 = vpop.permute.xlu0 %1744 }
 0x357   : > { %v1811_v10 = vsel %vm4125_vm0, %v3433_v63, %v1745_v6  ;;  %v3829_v0 = vpop.f32.mrf.mxu1  ;;  %v1582_v18 = vpop.permute.xlu2 %1581 }
 0x358   : > { %v1979_v52 = vpop.permute.xlu1 %1978 }
 0x359   : > { %v2015_v1 = vsel %vm1088_vm10, %v2007_v20, %v1979_v52  ;;  %v1907_v20 = vld [vmem:[#allocation2 + $0x92] sm:$0xff] }
 0x35a   : > { %2414 = vmatmul.msk.f32.gmra.mxu1 %vm4124_vm15, %v2015_v1  ;;  %vm4137_vm15 = vmmov %vm4125_vm0 }
 0x35b   : > { %vm4138_vm0 = vmmov %vm4126_vm1 }
 0x35e   : > { %v1769_v17 = vpop.permute.xlu0 %1768 }
 0x35f   : > { %v1819_v26 = vsel %vm1070_vm7, %v1811_v10, %v1769_v17  ;;  %v3839_v24 = vpop.f32.mrf.mxu1  ;;  %v1606_v21 = vpop.permute.xlu2 %1605 }
 0x360   : > { %v1925_v43 = vpop.permute.xlu1 %1924  ;;  %v1827_v3 = vsel %vm1088_vm10, %v1819_v26, %v1793_v37 }
 0x361   : > { %2404 = vmatmul.msk.f32.gmra.mxu3 %vm4126_vm1, %v1827_v3  ;;  %v2000_v49 = vsel %vm4129_vm4, %v3644_v39, %v1925_v43  ;;  %vm4139_vm1 = vmmov %vm4127_vm2 }
 0x362   : > { %vm4142_vm4 = vmmov %vm4138_vm0 }
 0x365   : > { %v3815_v41 = vpop.f32.mrf.mxu2 }
 0x366   : > { %v1548_v57 = vpop.permute.xlu0 %1547 }
 0x367   : > { %v1621_v28 = vsel %vm4127_vm2, %v3707_v4, %v1548_v57  ;;  %v3849_v33 = vpop.f32.mrf.mxu1  ;;  %v1797_v62 = vpop.permute.xlu2 %1796  ;;  %vm4140_vm2 = vmmov %vm4138_vm0 }
 0x368   : > { %v1957_v23 = vpop.permute.xlu1 %1956  ;;  %v1629_v5 = vsel %vm1070_vm7, %v1621_v28, %v1580_v45 }
 0x369   : > { %v1637_v63 = vsel %vm1088_vm10, %v1629_v5, %v1604_v40  ;;  %v2008_v19 = vsel %vm1070_vm7, %v2000_v49, %v1957_v23 }
 0x36a   : > { %2393 = vmatmul.msk.f32.gmra.mxu2 %vm4128_vm3, %v1637_v63  ;;  %vm4141_vm3 = vmmov %vm4139_vm1 }
 0x36d   : > { %v3822_v55 = vpop.f32.mrf.mxu2 }
 0x36e   : > { %v1747_v9 = vpop.permute.xlu0 %1746 }
 0x36f   : > { %v1812_v14 = vsel %vm4131_vm14, %v3565_v34, %v1747_v9  ;;  %v1987_v43 = vpop.permute.xlu2 %1986 }
 0x370   : > { %v1981_v47 = vpop.permute.xlu1 %1980 }
 0x371   : > { %v2016_v36 = vsel %vm1088_vm10, %v2008_v19, %v1981_v47 }
 0x372   : > { %2415 = vmatmul.msk.f32.gmra.mxu1 %vm4130_vm9, %v2016_v36  ;;  %vm4144_vm9 = vmmov %vm4139_vm1 }
 0x376   : > { %v1771_v46 = vpop.permute.xlu0 %1770  ;;  %v1685_v53 = vpop.f32.mrf.mxu2 }
 0x377   : > { %v1820_v35 = vsel %vm1070_vm7, %v1812_v14, %v1771_v46  ;;  %2098 = vrot.lane.b32.xlu0 %v1685_v53, %s2463_s22 }
 0x378   : > { %v1927_v39 = vpop.permute.xlu1 %1926  ;;  %v1828_v61 = vsel %vm1088_vm10, %v1820_v35, %v1795_v60 }
 0x379   : > { %2405 = vmatmul.msk.f32.gmra.mxu3 %vm4132_vm12, %v1828_v61  ;;  %v2001_v11 = vsel %vm4135_vm5, %v3707_v4, %v1927_v39  ;;  %vm4146_vm12 = vmmov %vm4139_vm1 }
 0x37e   : > { %v1550_v51 = vpop.permute.xlu0 %1549  ;;  %v1688_v2 = vpop.f32.mrf.mxu2 }
 0x37f   : > { %v1622_v34 = vsel %vm4133_vm8, %v3779_v15, %v1550_v51  ;;  %2100 = vrot.lane.b32.xlu1 %v1688_v2, %s2463_s22  ;;  %v1876_v59 = vpop.f32.mrf.mxu3 }
 0x380   : > { %v1959_v8 = vpop.permute.xlu1 %1958  ;;  %v1630_v16 = vsel %vm1070_vm7, %v1622_v34, %v1582_v18 }
 0x381   : > { %v1638_v32 = vsel %vm1088_vm10, %v1630_v16, %v1606_v21  ;;  %v2009_v13 = vsel %vm1070_vm7, %v2001_v11, %v1959_v8 }
 0x382   : > { %2394 = vmatmul.msk.f32.gmra.mxu2 %vm4134_vm11, %v1638_v32  ;;  %vm4148_vm11 = vmmov %vm4139_vm1 }
 0x386   : > { %v1749_v44 = vpop.permute.xlu0 %1748 }
 0x387   : > { %v1813_v48 = vsel %vm4137_vm15, %v3760_v7, %v1749_v44  ;;  %v1879_v29 = vpop.f32.mrf.mxu3 }
 0x388   : > { %v1983_v25 = vpop.permute.xlu1 %1982 }
 0x389   : > { %v2017_v42 = vsel %vm1088_vm10, %v2009_v13, %v1983_v25 }
 0x38a   : > { %2416 = vmatmul.msk.f32.gmra.mxu1 %vm4136_vm13, %v2017_v42  ;;  %vm4150_vm13 = vmmov %vm4139_vm1 }
 0x38d   : > { %v1691_v58 = vpop.f32.mrf.mxu2 }
 0x38e   : > { %v1773_v54 = vpop.permute.xlu0 %1772  ;;  %2102 = vrot.lane.b32.xlu1 %v1691_v58, %s2463_s22 }
 0x38f   : > { %v1821_v37 = vsel %vm1070_vm7, %v1813_v48, %v1773_v54  ;;  %v2066_v30 = vpop.f32.mrf.mxu1 }
 0x390   : > { %v1929_v4 = vpop.permute.xlu1 %1928  ;;  %2162 = vrot.lane.b32.xlu2 %v2066_v30, %s2465_s24  ;;  %v1829_v27 = vsel %vm1088_vm10, %v1821_v37, %v1797_v62 }
 0x391   : > { %2406 = vmatmul.msk.f32.gmra.mxu3 %vm4138_vm0, %v1829_v27  ;;  %v2002_v50 = vsel %vm4139_vm1, %v3779_v15, %v1929_v4  ;;  %vm4152_vm0 = vmmov %vm4139_vm1 }
 0x396   : > { %v1931_v52 = vpop.permute.xlu0 %1930 }
 0x397   : > { %v2003_v10 = vsel %vm4141_vm3, %v1907_v20, %v1931_v52 }
 0x398   : > { %v1961_v31 = vpop.permute.xlu1 %1960  ;;  %2130 = vrot.lane.b32.xlu2 %v1876_v59, %s2464_s23 }
 0x399   : > { %v2010_v6 = vsel %vm1070_vm7, %v2002_v50, %v1961_v31 }
 0x39c   : > { %v1882_v7 = vpop.f32.mrf.mxu3 }
 0x39d   : > { %2134 = vrot.lane.b32.xlu1 %v1882_v7, %s2464_s23 }
 0x3a0   : > { %v1985_v45 = vpop.permute.xlu1 %1984 }
 0x3a1   : > { %v2018_v38 = vsel %vm1088_vm10, %v2010_v6, %v1985_v45 }
 0x3a2   : > { %2417 = vmatmul.msk.f32.gmra.mxu1 %vm4140_vm2, %v2018_v38  ;;  %vm4154_vm2 = vmmov %vm4152_vm0 }
 0x3a5   : > { %v1694_v1 = vpop.f32.mrf.mxu2 }
 0x3a6   : > { %2104 = vrot.lane.b32.xlu2 %v1694_v1, %s2463_s22 }
 0x3a7   : > { %v2069_v17 = vpop.f32.mrf.mxu1 }
 0x3a8   : > { %v1963_v26 = vpop.permute.xlu1 %1962  ;;  %2164 = vrot.lane.b32.xlu0 %v2069_v17, %s2465_s24 }
 0x3a9   : > { %v2011_v15 = vsel %vm1070_vm7, %v2003_v10, %v1963_v26 }
 0x3aa   : > { %v2019_v3 = vsel %vm1088_vm10, %v2011_v15, %v1987_v43  ;;  %vm4143_vm10 = vcmask 31744  }
 0x3ab   : > { %2418 = vmatmul.msk.f32.gmra.mxu1 %vm4142_vm4, %v2019_v3  ;;  %vm4145_vm14 = vmmov %vm4143_vm10 }
 0x3ac   : > { %vm4147_vm8 = vmmov %vm4143_vm10 }
 0x3ad   : > { %vm4149_vm5 = vmmov %vm4147_vm8 }
 0x3ae   : > { %vm4151_vm15 = vmmov %vm4149_vm5 }
 0x3af   : > { %vm4153_vm1 = vmmov %vm4149_vm5 }
 0x3b0   : > { %vm4155_vm3 = vmmov %vm4153_vm1 }
 0x3b1   : > { %vm4156_vm4 = vmmov %vm4152_vm0 }
 0x3b4   : > { %v1885_v40 = vpop.f32.mrf.mxu3 }
 0x3b5   : > { %2136 = vrot.lane.b32.xlu1 %v1885_v40, %s2464_s23 }
 0x3bd   : > { %v1697_v57 = vpop.f32.mrf.mxu2 }
 0x3be   : > { %2106 = vrot.lane.b32.xlu2 %v1697_v57, %s2463_s22 }
 0x3bf   : > { %v2072_v28 = vpop.f32.mrf.mxu1 }
 0x3c0   : > { %2166 = vrot.lane.b32.xlu0 %v2072_v28, %s2465_s24 }
 0x3c8   : > { %2132 = vrot.lane.b32.xlu0 %v1879_v29, %s2464_s23 }
 0x3cc   : > { %v1888_v23 = vpop.f32.mrf.mxu3 }
 0x3cd   : > { %2138 = vrot.lane.b32.xlu1 %v1888_v23, %s2464_s23 }
 0x3d5   : > { %v1700_v5 = vpop.f32.mrf.mxu2 }
 0x3d6   : > { %2108 = vrot.lane.b32.xlu2 %v1700_v5, %s2463_s22 }
 0x3d7   : > { %v2075_v63 = vpop.f32.mrf.mxu1 }
 0x3d8   : > { %2168 = vrot.lane.b32.xlu0 %v2075_v63, %s2465_s24 }
 0x3e4   : > { %v1891_v60 = vpop.f32.mrf.mxu3 }
 0x3e5   : > { %2140 = vrot.lane.b32.xlu1 %v1891_v60, %s2464_s23 }
 0x3e9   : > { %v2099_v19 = vpop.permute.xlu0 %2098 }
 0x3ea   : > { %v2163_v9 = vpop.permute.xlu2 %2162  ;;  %v2186_v36 = vsel %vm4143_vm10, %v3829_v0, %v2099_v19  ;;  %vm4157_vm10 = vmmov %vm4153_vm1 }
 0x3ed   : > { %v1703_v49 = vpop.f32.mrf.mxu2 }
 0x3ee   : > { %2110 = vrot.lane.b32.xlu2 %v1703_v49, %s2463_s22 }
 0x3ef   : > { %v2078_v47 = vpop.f32.mrf.mxu1 }
 0x3f0   : > { %2170 = vrot.lane.b32.xlu0 %v2078_v47, %s2465_s24 }
 0x3f1   : > { %v2101_v61 = vpop.permute.xlu1 %2100 }
 0x3f2   : > { %v2131_v18 = vpop.permute.xlu2 %2130  ;;  %v2187_v13 = vsel %vm4147_vm8, %v3839_v24, %v2101_v61 }
 0x3f3   : > { %v2194_v14 = vsel %vm4144_vm9, %v2186_v36, %v2131_v18  ;;  %vm4158_vm9 = vmmov %vm4152_vm0 }
 0x3f4   : > { %v2202_v46 = vsel %vm1061_vm6, %v2194_v14, %v2163_v9 }
 0x3f5   : > { %2210 = vst.msk [vmem:[%s3896_s12] sm:$0xff] %vm1070_vm7, %v2202_v46  ;;  %v2241_v42 = vmul.f32 %v2202_v46, %v2202_v46  ;;  %v2218_v58 = vsel %vm1070_vm7, %v2202_v46, 0.0 }
 0x3f7   : > { %v2249_v30 = vsel %vm1070_vm7, %v2241_v42, 0.0 }
 0x3fc   : > { %v1894_v53 = vpop.f32.mrf.mxu3 }
 0x3fd   : > { %2142 = vrot.lane.b32.xlu1 %v1894_v53, %s2464_s23 }
 0x400   : > { %v2103_v2 = vpop.permute.xlu1 %2102  ;;  %v2105_v50 = vpop.permute.xlu2 %2104 }
 0x401   : > { %v2188_v16 = vsel %vm4145_vm14, %v3849_v33, %v2103_v2  ;;  %v2189_v45 = vsel %vm4149_vm5, %v3808_v22, %v2105_v50 }
 0x405   : > { %v1706_v35 = vpop.f32.mrf.mxu2 }
 0x406   : > { %2112 = vrot.lane.b32.xlu2 %v1706_v35, %s2463_s22  ;;  %s2366_s22 = sshll.u32 %s4162_s16, 1 }
 0x407   : > { %v2081_v0 = vpop.f32.mrf.mxu1  ;;  %s213_s13 = scalar_lea.vmem %s3977_s4, %s2366_s22 }
 0x408   : > { %2172 = vrot.lane.b32.xlu0 %v2081_v0, %s2465_s24 }
 0x40f   : > { %v2135_v8 = vpop.permute.xlu1 %2134 }
 0x410   : > { %v2196_v32 = vsel %vm4146_vm12, %v2188_v16, %v2135_v8 }
 0x414   : > { %v1897_v39 = vpop.f32.mrf.mxu3 }
 0x415   : > { %2144 = vrot.lane.b32.xlu1 %v1897_v39, %s2464_s23 }
 0x418   : > { %v2107_v15 = vpop.permute.xlu2 %2106 }
 0x419   : > { %v2190_v22 = vsel %vm4151_vm15, %v3815_v41, %v2107_v15 }
 0x41a   : > { %v2165_v21 = vpop.permute.xlu0 %2164 }
 0x41f   : > { %v2084_v51 = vpop.f32.mrf.mxu1 }
 0x420   : > { %2174 = vrot.lane.b32.xlu0 %v2084_v51, %s2465_s24 }
 0x427   : > { %v2137_v6 = vpop.permute.xlu1 %2136 }
 0x428   : > { %v2087_v34 = vpop.f32.mrf.mxu1  ;;  %v2197_v38 = vsel %vm4150_vm13, %v2189_v45, %v2137_v6 }
 0x429   : > { %2176 = vrot.lane.b32.xlu2 %v2087_v34, %s2465_s24 }
 0x430   : > { %v2109_v23 = vpop.permute.xlu2 %2108 }
 0x431   : > { %v2191_v60 = vsel %vm4153_vm1, %v3822_v55, %v2109_v23 }
 0x432   : > { %v2167_v44 = vpop.permute.xlu0 %2166 }
 0x433   : > { %v2204_v11 = vsel %vm1061_vm6, %v2196_v32, %v2167_v44 }
 0x434   : > { %2212 = vst.msk [vmem:[%s3896_s12 + $0x10] sm:$0xff] %vm1070_vm7, %v2204_v11  ;;  %v2243_v54 = vmul.f32 %v2204_v11, %v2204_v11  ;;  %v2221_v24 = vsel %vm1070_vm7, %v2204_v11, 0.0 }
 0x436   : > { %v2252_v31 = vsel %vm1070_vm7, %v2243_v54, 0.0 }
 0x43a   : > { %v2133_v25 = vpop.permute.xlu0 %2132 }
 0x43b   : > { %v2195_v59 = vsel %vm4148_vm11, %v2187_v13, %v2133_v25 }
 0x43c   : > { %v2203_v48 = vsel %vm1061_vm6, %v2195_v59, %v2165_v21 }
 0x43d   : > { %2211 = vst.msk [vmem:[%s3896_s12 + $0x8] sm:$0xff] %vm1070_vm7, %v2203_v48  ;;  %v2219_v33 = vsel %vm1070_vm7, %v2203_v48, 0.0  ;;  %v2242_v62 = vmul.f32 %v2203_v48, %v2203_v48 }
 0x43e   : > { %v2220_v37 = vadd.f32 %v2219_v33, %v2218_v58 }
 0x43f   : > { %v2250_v4 = vsel %vm1070_vm7, %v2242_v62, 0.0  ;;  %v2139_v3 = vpop.permute.xlu1 %2138 }
 0x440   : > { %v2251_v27 = vadd.f32 %v2250_v4, %v2249_v30  ;;  %v2222_v29 = vadd.f32 %v2221_v24, %v2220_v37  ;;  %v2198_v40 = vsel %vm4152_vm0, %v2190_v22, %v2139_v3 }
 0x442   : > { %v2253_v7 = vadd.f32 %v2252_v31, %v2251_v27 }
 0x448   : > { %v2111_v63 = vpop.permute.xlu2 %2110 }
 0x44a   : > { %v2169_v20 = vpop.permute.xlu0 %2168 }
 0x44b   : > { %v2205_v52 = vsel %vm1061_vm6, %v2197_v38, %v2169_v20 }
 0x44c   : > { %2213 = vst.msk [vmem:[%s3896_s12 + $0x18] sm:$0xff] %vm1070_vm7, %v2205_v52  ;;  %v2223_v1 = vsel %vm1070_vm7, %v2205_v52, 0.0  ;;  %v2244_v10 = vmul.f32 %v2205_v52, %v2205_v52 }
 0x44d   : > { %v2224_v17 = vadd.f32 %v2223_v1, %v2222_v29 }
 0x44e   : > { %v2254_v26 = vsel %vm1070_vm7, %v2244_v10, 0.0 }
 0x44f   : > { %v2255_v43 = vadd.f32 %v2254_v26, %v2253_v7 }
 0x457   : > { %v2141_v5 = vpop.permute.xlu1 %2140 }
 0x458   : > { %v2199_v9 = vsel %vm4154_vm2, %v2191_v60, %v2141_v5 }
 0x460   : > { %v2113_v47 = vpop.permute.xlu2 %2112 }
 0x461   : > { %v2193_v36 = vsel %vm4155_vm3, %v3846_v12, %v2113_v47  ;;  %v2192_v12 = vsel %vm4157_vm10, %v3837_v56, %v2111_v63 }
 0x462   : > { %v2171_v57 = vpop.permute.xlu0 %2170 }
 0x463   : > { %v2206_v28 = vsel %vm1061_vm6, %v2198_v40, %v2171_v57 }
 0x464   : > { %2214 = vst.msk [vmem:[%s3896_s12 + $0x20] sm:$0xff] %vm1070_vm7, %v2206_v28  ;;  %v2245_v55 = vmul.f32 %v2206_v28, %v2206_v28  ;;  %v2225_v35 = vsel %vm1070_vm7, %v2206_v28, 0.0 }
 0x465   : > { %v2226_v51 = vadd.f32 %v2225_v35, %v2224_v17 }
 0x466   : > { %v2256_v39 = vsel %vm1070_vm7, %v2245_v55, 0.0 }
 0x467   : > { %v2257_v8 = vadd.f32 %v2256_v39, %v2255_v43 }
 0x46f   : > { %v2143_v41 = vpop.permute.xlu1 %2142 }
 0x470   : > { %v2200_v2 = vsel %vm4158_vm9, %v2192_v12, %v2143_v41 }
 0x47a   : > { %v2173_v49 = vpop.permute.xlu0 %2172 }
 0x47b   : > { %v2207_v19 = vsel %vm1061_vm6, %v2199_v9, %v2173_v49 }
 0x47c   : > { %2215 = vst.msk [vmem:[%s3896_s12 + $0x28] sm:$0xff] %vm1070_vm7, %v2207_v19  ;;  %v2246_v0 = vmul.f32 %v2207_v19, %v2207_v19  ;;  %v2227_v61 = vsel %vm1070_vm7, %v2207_v19, 0.0 }
 0x47d   : > { %v2228_v16 = vadd.f32 %v2227_v61, %v2226_v51 }
 0x47e   : > { %v2258_v34 = vsel %vm1070_vm7, %v2246_v0, 0.0 }
 0x47f   : > { %v2259_v25 = vadd.f32 %v2258_v34, %v2257_v8 }
 0x483   : > { %v2177_v14 = vpop.permute.xlu2 %2176 }
 0x487   : > { %v2145_v18 = vpop.permute.xlu1 %2144 }
 0x488   : > { %v2201_v46 = vsel %vm4156_vm4, %v2193_v36, %v2145_v18 }
 0x489   : > { %v2209_v53 = vsel %vm1061_vm6, %v2201_v46, %v2177_v14 }
 0x48a   : > { %2217 = vst.msk [vmem:[%s3896_s12 + $0x38] sm:$0xff] %vm1070_vm7, %v2209_v53  ;;  %v2248_v44 = vmul.f32 %v2209_v53, %v2209_v53  ;;  %v2231_v56 = vsel %vm1070_vm7, %v2209_v53, 0.0 }
 0x48c   : > { %v2262_v54 = vsel %vm1070_vm7, %v2248_v44, 0.0 }
 0x492   : > { %v2175_v21 = vpop.permute.xlu0 %2174 }
 0x493   : > { %v2208_v32 = vsel %vm1061_vm6, %v2200_v2, %v2175_v21  ;;  %vm2239_vm6 = vcmask 122880  }
 0x494   : > { %2216 = vst.msk [vmem:[%s3896_s12 + $0x30] sm:$0xff] %vm1070_vm7, %v2208_v32  ;;  %v2229_v11 = vsel %vm1070_vm7, %v2208_v32, 0.0  ;;  %v2247_v13 = vmul.f32 %v2208_v32, %v2208_v32 }
 0x495   : > { %v2230_v42 = vadd.f32 %v2229_v11, %v2228_v16 }
 0x496   : > { %v2260_v59 = vsel %vm1070_vm7, %v2247_v13, 0.0 }
 0x497   : > { %v2232_v48 = vadd.f32 %v2231_v56, %v2230_v42  ;;  %v2261_v58 = vadd.f32 %v2260_v59, %v2259_v25 }
 0x499   : > { %v2233_v33 = vrot.slane %v2232_v48, 4  ;;  %v2263_v62 = vadd.f32 %v2262_v54, %v2261_v58 }
 0x49b   : > { %v2234_v37 = vadd.f32 %v2233_v33, %v2232_v48  ;;  %v2264_v30 = vrot.slane %v2263_v62, 4 }
 0x49d   : > { %v2235_v24 = vrot.slane %v2234_v37, 2  ;;  %v2265_v4 = vadd.f32 %v2264_v30, %v2263_v62 }
 0x49f   : > { %v2236_v27 = vadd.f32 %v2235_v24, %v2234_v37  ;;  %v2266_v29 = vrot.slane %v2265_v4, 2 }
 0x4a1   : > { %v2237_v31 = vrot.slane %v2236_v27, 1  ;;  %v2267_v7 = vadd.f32 %v2266_v29, %v2265_v4 }
 0x4a3   : > { %v2238_v50 = vadd.f32 %v2237_v31, %v2236_v27  ;;  %v2268_v6 = vrot.slane %v2267_v7, 1 }
 0x4a5   : > { %2240 = vst.msk [vmem:[%s213_s13] sm:$0x1] %vm2239_vm6, %v2238_v50  ;;  %v2269_v45 = vadd.f32 %v2268_v6, %v2267_v7 }
 0x4a7   : > { %2270 = vst.msk [vmem:[%s213_s13 + $0x1] sm:$0x1] %vm2239_vm6, %v2269_v45 }
 0x4a8 PF: > { %s15_s15 = sadd.s32 1, %s2461_s15  }
 0x4a9   : > { %p12_p5 = scmp.ge.s32.totalorder %s15_s15, 4  }
 0x4ab   :  { %14 = sbr.rel (!%p12_p5) target bundleno = 1 (0x1), region = 79 }

</bundles_post_ra>
